<compile_context>
chip_gen: v6e
topology: v6e:2x2x1
jax: 0.10.0
libtpu: 0.0.40
codegen_flags: <defaults>
</compile_context>

<pallas_src>
import jax
import jax.numpy as jnp
from jax.experimental import pallas as pl
from jax.experimental.pallas import tpu as pltpu


def gcn_tile_kernel(adj_ref, dis_ref, h0_ref,
                    wconv_ref, bconv_ref, gamma_ref, beta_ref,
                    pooled_ref):
    """Forward for a tile of B_TILE dense graphs (one grid step)."""
    BT, N, E = h0_ref.shape
    L = wconv_ref.shape[0]

    adj = adj_ref[...]                                   # (BT, N, N) bf16 0/1
    dis3 = dis_ref[...]                                  # (BT, N, 1) f32 d^-1/2
    # Flatten node axis: all node-wise ops run as (BT*N, E) = (128, 128) slabs.
    h = h0_ref[...].astype(jnp.float32).reshape(BT * N, E)

    for l in range(L):                                   # static unroll
        # GCNConv: D^-1/2 (A + I) D^-1/2 @ h @ W + b   (normalization fused)
        h3 = h.reshape(BT, N, E)
        hs3 = h3 * dis3                                  # D^-1/2 h      (f32)
        neigh = jnp.einsum('bij,bjf->bif', adj, hs3.astype(jnp.bfloat16),
                           preferred_element_type=jnp.float32)
        agg = ((neigh + hs3) * dis3).reshape(BT * N, E)  # + self loop, left scale
        h = jnp.dot(agg.astype(jnp.bfloat16), wconv_ref[l],
                    preferred_element_type=jnp.float32) + bconv_ref[l]

        # NormalizeGNN: LayerNorm over feature dim (f32 stats, affine, eps=1e-5)
        mu = jnp.mean(h, axis=-1, keepdims=True)
        var = jnp.mean((h - mu) * (h - mu), axis=-1, keepdims=True)
        h = (h - mu) * jax.lax.rsqrt(var + 1e-5)
        h = h * gamma_ref[l] + beta_ref[l]

        # activation (ReLU); dropout = identity in eval mode
        h = jnp.maximum(h, 0.0)
        # TODO(synk): skip_type other than 'None' (Residual/Jumping/...) not
        # implemented; args.skip_type == 'None' so no skip layers exist.

    # GlobalPooling: mean over nodes per graph -> lane-dense (BT, E) output.
    # TODO(synk): variable-size graphs would need a node mask in LN + pooling.
    pooled_ref[...] = jnp.mean(h.reshape(BT, N, E), axis=1)


def gcn_graph_forward(adj, nfeat, params, *, b_tile=8):
    """adj: (B, N, N) raw 0/1 adjacency (no self loops); nfeat: (B, N, F_in).

    Returns (B, output_dim) f32 graph predictions.
    """
    B, N, _ = nfeat.shape
    wenc, benc, wconv, bconv, gamma, beta, w1, b1, w2, b2 = params
    L, E, _ = wconv.shape

    # ---- XLA-side preprocessing (cheap; keeps the kernel lane-dense) ----
    deg = jnp.sum(adj, axis=-1) + 1.0                        # degrees of A + I
    d_inv_sqrt = jax.lax.rsqrt(deg)[..., None]               # (B, N, 1) f32
    # atom_encoder -> ReLU (dropout identity); tiny K=F_in matmul stays in XLA.
    h0 = jnp.maximum(jnp.einsum('bnf,fe->bne', nfeat, wenc) + benc, 0.0)

    # Pad batch to a multiple of b_tile (padded graphs are empty; rows dropped).
    B_pad = ((B + b_tile - 1) // b_tile) * b_tile
    if B_pad != B:
        pad = B_pad - B
        adj = jnp.pad(adj, ((0, pad), (0, 0), (0, 0)))
        d_inv_sqrt = jnp.pad(d_inv_sqrt, ((0, pad), (0, 0), (0, 0)),
                             constant_values=1.0)
        h0 = jnp.pad(h0, ((0, pad), (0, 0), (0, 0)))

    adj_bf = adj.astype(jnp.bfloat16)          # 0/1 exact in bf16, halves traffic
    h0_bf = h0.astype(jnp.bfloat16)
    wconv_bf = wconv.astype(jnp.bfloat16)

    def rep(shape):
        # full-array block, replicated (constant index) across the batch grid
        # TODO(synk): for large scaled-up shapes on v7x, single-buffer these
        # replicated weights (pipeline_mode) to save VMEM.
        return pl.BlockSpec(shape, lambda i, _nd=len(shape): (0,) * _nd)

    grid_spec = pltpu.PrefetchScalarGridSpec(
        num_scalar_prefetch=0,
        grid=(B_pad // b_tile,),
        in_specs=[
            pl.BlockSpec((b_tile, N, N), lambda i: (i, 0, 0)),   # raw adjacency
            pl.BlockSpec((b_tile, N, 1), lambda i: (i, 0, 0)),   # d^-1/2
            pl.BlockSpec((b_tile, N, E), lambda i: (i, 0, 0)),   # encoded feats
            rep(wconv_bf.shape), rep(bconv.shape),
            rep(gamma.shape), rep(beta.shape),
        ],
        out_specs=pl.BlockSpec((b_tile, E), lambda i: (i, 0)),
    )

    pooled = pl.pallas_call(
        gcn_tile_kernel,
        out_shape=jax.ShapeDtypeStruct((B_pad, E), jnp.float32),
        grid_spec=grid_spec,
        compiler_params=pltpu.CompilerParams(
            dimension_semantics=("parallel",),
            vmem_limit_bytes=32 * 1024 * 1024),
    )(adj_bf, d_inv_sqrt, h0_bf, wconv_bf, bconv, gamma, beta)[:B]

    # ---- GraphPredict head in XLA (1 row per graph; lane-dense pooled input) ----
    p = jnp.maximum(jnp.dot(pooled, w1) + b1, 0.0)
    return jnp.dot(p, w2) + b2


def gcn_graph_reference(adj, nfeat, params):
    """Pure-JAX f32 reference of the same forward pass (for validation)."""
    wenc, benc, wconv, bconv, gamma, beta, w1, b1, w2, b2 = params
    B, N, _ = adj.shape
    a_hat = adj + jnp.eye(N, dtype=adj.dtype)[None]
    dis = jax.lax.rsqrt(jnp.sum(a_hat, axis=-1))
    a_norm = a_hat * dis[:, :, None] * dis[:, None, :]
    h = jnp.maximum(jnp.einsum('bnf,fe->bne', nfeat, wenc) + benc, 0.0)
    for l in range(wconv.shape[0]):
        h = jnp.einsum('bij,bjf->bif', a_norm, h)
        h = jnp.einsum('bnf,fe->bne', h, wconv[l]) + bconv[l]
        mu = jnp.mean(h, axis=-1, keepdims=True)
        var = jnp.mean((h - mu) ** 2, axis=-1, keepdims=True)
        h = (h - mu) * jax.lax.rsqrt(var + 1e-5)
        h = h * gamma[l] + beta[l]
        h = jnp.maximum(h, 0.0)
    g = jnp.mean(h, axis=1)
    p = jnp.maximum(jnp.dot(g, w1) + b1, 0.0)
    return jnp.dot(p, w2) + b2


def make_params(key, f_in, embed_dim, output_dim, num_layer):
    hidden = embed_dim // 2
    ks = jax.random.split(key, 4)
    scale = 0.1
    wenc = scale * jax.random.normal(ks[0], (f_in, embed_dim), jnp.float32)
    benc = jnp.zeros((1, embed_dim), jnp.float32)
    wconv = scale * jax.random.normal(ks[1], (num_layer, embed_dim, embed_dim),
                                      jnp.float32)
    bconv = jnp.zeros((num_layer, 1, embed_dim), jnp.float32)
    gamma = jnp.ones((num_layer, 1, embed_dim), jnp.float32)
    beta = jnp.zeros((num_layer, 1, embed_dim), jnp.float32)
    w1 = scale * jax.random.normal(ks[2], (embed_dim, hidden), jnp.float32)
    b1 = jnp.zeros((1, hidden), jnp.float32)
    w2 = scale * jax.random.normal(ks[3], (hidden, output_dim), jnp.float32)
    b2 = jnp.zeros((1, output_dim), jnp.float32)
    return (wenc, benc, wconv, bconv, gamma, beta, w1, b1, w2, b2)


if __name__ == "__main__":
    B, N, F_IN = 16, 16, 8
    EMBED_DIM, OUTPUT_DIM, NUM_LAYER = 128, 4, 2
    B_TILE = 8   # B_TILE * N = 128 matmul rows; grid = 2 (even for v7x's 2 TCs)

    key = jax.random.PRNGKey(0)
    k_feat, k_adj, k_par = jax.random.split(key, 3)

    nfeat = jax.random.normal(k_feat, (B, N, F_IN), jnp.float32)
    # random undirected graph (dense 0/1 adjacency, symmetric, no self loops)
    rnd = jax.random.uniform(k_adj, (B, N, N))
    adj = (rnd + jnp.swapaxes(rnd, -1, -2) > 1.0).astype(jnp.float32)
    adj = adj * (1.0 - jnp.eye(N, dtype=jnp.float32)[None])

    params = make_params(k_par, F_IN, EMBED_DIM, OUTPUT_DIM, NUM_LAYER)

    out = gcn_graph_forward(adj, nfeat, params, b_tile=B_TILE)
    out = jax.block_until_ready(out)
    assert out.shape == (B, OUTPUT_DIM) and out.dtype == jnp.float32

    ref = gcn_graph_reference(adj, nfeat, params)
    # bf16 matmul operands in the kernel vs f32 reference -> loose tolerance.
    assert float(jnp.max(jnp.abs(out - ref))) < 1e-1
    print("KERNEL_OK")
</pallas_src>

<mosaic_0001>
module attributes {stable_mosaic.version = 11 : i64} {
  func.func @gcn_tile_kernel(%arg0: i32, %arg1: memref<8x16x16xbf16, #tpu.memory_space<vmem>>, %arg2: memref<8x16x1xf32, #tpu.memory_space<vmem>>, %arg3: memref<8x16x128xbf16, #tpu.memory_space<vmem>>, %arg4: memref<2x128x128xbf16, #tpu.memory_space<vmem>>, %arg5: memref<2x1x128xf32, #tpu.memory_space<vmem>>, %arg6: memref<2x1x128xf32, #tpu.memory_space<vmem>>, %arg7: memref<2x1x128xf32, #tpu.memory_space<vmem>>, %arg8: memref<8x128xf32, #tpu.memory_space<vmem>>) attributes {dimension_semantics = [#tpu.dimension_semantics<parallel>], iteration_bounds = array<i64: 2>, scalar_prefetch = 0 : i64, scratch_operands = 0 : i64, tpu.core_type = #tpu.core_type<tc>, window_params = [{transform_indices = @transform_0, window_bounds = array<i64: 8, 16, 16>}, {transform_indices = @transform_1, window_bounds = array<i64: 8, 16, 1>}, {transform_indices = @transform_2, window_bounds = array<i64: 8, 16, 128>}, {pipeline_mode = #tpu.pipeline_mode<synchronous>, transform_indices = @transform_3, window_bounds = array<i64: 2, 128, 128>}, {pipeline_mode = #tpu.pipeline_mode<synchronous>, transform_indices = @transform_4, window_bounds = array<i64: 2, 1, 128>}, {pipeline_mode = #tpu.pipeline_mode<synchronous>, transform_indices = @transform_5, window_bounds = array<i64: 2, 1, 128>}, {pipeline_mode = #tpu.pipeline_mode<synchronous>, transform_indices = @transform_6, window_bounds = array<i64: 2, 1, 128>}, {transform_indices = @transform_7, window_bounds = array<i64: 8, 128>}]} {
    %c0 = arith.constant 0 : index
    %c0_0 = arith.constant 0 : index
    %c0_1 = arith.constant 0 : index
    %0 = vector.load %arg1[%c0, %c0_0, %c0_1] : memref<8x16x16xbf16, #tpu.memory_space<vmem>>, vector<8x16x16xbf16>
    %c0_2 = arith.constant 0 : index
    %c0_3 = arith.constant 0 : index
    %c0_4 = arith.constant 0 : index
    %1 = vector.load %arg2[%c0_2, %c0_3, %c0_4] : memref<8x16x1xf32, #tpu.memory_space<vmem>>, vector<8x16x1xf32>
    %c0_5 = arith.constant 0 : index
    %c0_6 = arith.constant 0 : index
    %c0_7 = arith.constant 0 : index
    %2 = vector.load %arg3[%c0_5, %c0_6, %c0_7] : memref<8x16x128xbf16, #tpu.memory_space<vmem>>, vector<8x16x128xbf16>
    %3 = arith.extf %2 : vector<8x16x128xbf16> to vector<8x16x128xf32>
    %4 = vector.shape_cast %3 : vector<8x16x128xf32> to vector<128x128xf32>
    %5 = vector.shape_cast %4 : vector<128x128xf32> to vector<8x16x128xf32>
    %6 = vector.broadcast %1 : vector<8x16x1xf32> to vector<8x16x128xf32>
    %7 = arith.mulf %5, %6 : vector<8x16x128xf32>
    %8 = arith.truncf %7 : vector<8x16x128xf32> to vector<8x16x128xbf16>
    "tpu.trace_start"() <{level = 10 : i32, message = "bij,bjf->bif"}> : () -> ()
    %cst = arith.constant dense<0.000000e+00> : vector<8x16x128xf32>
    %9 = tpu.matmul %0, %8, %cst {dimension_numbers = #tpu.dot_dimension_numbers<[2], [1], [1], [2], [0, 0, 0, 1, 1, 2], [0], [0]>} : vector<8x16x16xbf16>, vector<8x16x128xbf16>, vector<8x16x128xf32> -> vector<8x16x128xf32>
    "tpu.trace_stop"() : () -> ()
    %10 = arith.addf %9, %7 : vector<8x16x128xf32>
    %11 = vector.broadcast %1 : vector<8x16x1xf32> to vector<8x16x128xf32>
    %12 = arith.mulf %10, %11 : vector<8x16x128xf32>
    %13 = vector.shape_cast %12 : vector<8x16x128xf32> to vector<128x128xf32>
    %14 = arith.truncf %13 : vector<128x128xf32> to vector<128x128xbf16>
    %c0_8 = arith.constant 0 : index
    %c0_9 = arith.constant 0 : index
    %c0_10 = arith.constant 0 : index
    %15 = vector.load %arg4[%c0_8, %c0_9, %c0_10] : memref<2x128x128xbf16, #tpu.memory_space<vmem>>, vector<1x128x128xbf16>
    %16 = vector.shape_cast %15 : vector<1x128x128xbf16> to vector<128x128xbf16>
    %cst_11 = arith.constant dense<0.000000e+00> : vector<128x128xf32>
    %17 = tpu.matmul %14, %16, %cst_11 {dimension_numbers = #tpu.dot_dimension_numbers<[1], [0], [0], [1], [0, 0, 1, 1], [], []>} : vector<128x128xbf16>, vector<128x128xbf16>, vector<128x128xf32> -> vector<128x128xf32>
    %c0_12 = arith.constant 0 : index
    %c0_13 = arith.constant 0 : index
    %c0_14 = arith.constant 0 : index
    %18 = vector.load %arg5[%c0_12, %c0_13, %c0_14] : memref<2x1x128xf32, #tpu.memory_space<vmem>>, vector<1x1x128xf32>
    %19 = vector.shape_cast %18 : vector<1x1x128xf32> to vector<1x128xf32>
    %20 = vector.broadcast %19 : vector<1x128xf32> to vector<128x128xf32>
    %21 = arith.addf %17, %20 : vector<128x128xf32>
    %cst_15 = arith.constant dense<0.000000e+00> : vector<128xf32>
    %22 = vector.multi_reduction <add>, %21, %cst_15 [1] : vector<128x128xf32> to vector<128xf32>
    %23 = vector.shape_cast %22 : vector<128xf32> to vector<128x1xf32>
    %cst_16 = arith.constant 1.280000e+02 : f32
    %24 = vector.broadcast %cst_16 : f32 to vector<128x1xf32>
    %25 = arith.divf %23, %24 : vector<128x1xf32>
    %26 = vector.broadcast %25 : vector<128x1xf32> to vector<128x128xf32>
    %27 = arith.subf %21, %26 : vector<128x128xf32>
    %28 = vector.broadcast %25 : vector<128x1xf32> to vector<128x128xf32>
    %29 = arith.subf %21, %28 : vector<128x128xf32>
    %30 = arith.mulf %27, %29 : vector<128x128xf32>
    %cst_17 = arith.constant dense<0.000000e+00> : vector<128xf32>
    %31 = vector.multi_reduction <add>, %30, %cst_17 [1] : vector<128x128xf32> to vector<128xf32>
    %32 = vector.shape_cast %31 : vector<128xf32> to vector<128x1xf32>
    %cst_18 = arith.constant 1.280000e+02 : f32
    %33 = vector.broadcast %cst_18 : f32 to vector<128x1xf32>
    %34 = arith.divf %32, %33 : vector<128x1xf32>
    %35 = vector.broadcast %25 : vector<128x1xf32> to vector<128x128xf32>
    %36 = arith.subf %21, %35 : vector<128x128xf32>
    %cst_19 = arith.constant 9.99999974E-6 : f32
    %37 = vector.broadcast %cst_19 : f32 to vector<128x1xf32>
    %38 = arith.addf %34, %37 : vector<128x1xf32>
    %39 = math.rsqrt %38 : vector<128x1xf32>
    %40 = vector.broadcast %39 : vector<128x1xf32> to vector<128x128xf32>
    %41 = arith.mulf %36, %40 : vector<128x128xf32>
    %c0_20 = arith.constant 0 : index
    %c0_21 = arith.constant 0 : index
    %c0_22 = arith.constant 0 : index
    %42 = vector.load %arg6[%c0_20, %c0_21, %c0_22] : memref<2x1x128xf32, #tpu.memory_space<vmem>>, vector<1x1x128xf32>
    %43 = vector.shape_cast %42 : vector<1x1x128xf32> to vector<1x128xf32>
    %44 = vector.broadcast %43 : vector<1x128xf32> to vector<128x128xf32>
    %45 = arith.mulf %41, %44 : vector<128x128xf32>
    %c0_23 = arith.constant 0 : index
    %c0_24 = arith.constant 0 : index
    %c0_25 = arith.constant 0 : index
    %46 = vector.load %arg7[%c0_23, %c0_24, %c0_25] : memref<2x1x128xf32, #tpu.memory_space<vmem>>, vector<1x1x128xf32>
    %47 = vector.shape_cast %46 : vector<1x1x128xf32> to vector<1x128xf32>
    %48 = vector.broadcast %47 : vector<1x128xf32> to vector<128x128xf32>
    %49 = arith.addf %45, %48 : vector<128x128xf32>
    %cst_26 = arith.constant 0.000000e+00 : f32
    %50 = vector.broadcast %cst_26 : f32 to vector<128x128xf32>
    %51 = arith.maximumf %49, %50 : vector<128x128xf32>
    %52 = vector.shape_cast %51 : vector<128x128xf32> to vector<8x16x128xf32>
    %53 = vector.broadcast %1 : vector<8x16x1xf32> to vector<8x16x128xf32>
    %54 = arith.mulf %52, %53 : vector<8x16x128xf32>
    %55 = arith.truncf %54 : vector<8x16x128xf32> to vector<8x16x128xbf16>
    "tpu.trace_start"() <{level = 10 : i32, message = "bij,bjf->bif"}> : () -> ()
    %cst_27 = arith.constant dense<0.000000e+00> : vector<8x16x128xf32>
    %56 = tpu.matmul %0, %55, %cst_27 {dimension_numbers = #tpu.dot_dimension_numbers<[2], [1], [1], [2], [0, 0, 0, 1, 1, 2], [0], [0]>} : vector<8x16x16xbf16>, vector<8x16x128xbf16>, vector<8x16x128xf32> -> vector<8x16x128xf32>
    "tpu.trace_stop"() : () -> ()
    %57 = arith.addf %56, %54 : vector<8x16x128xf32>
    %58 = vector.broadcast %1 : vector<8x16x1xf32> to vector<8x16x128xf32>
    %59 = arith.mulf %57, %58 : vector<8x16x128xf32>
    %60 = vector.shape_cast %59 : vector<8x16x128xf32> to vector<128x128xf32>
    %61 = arith.truncf %60 : vector<128x128xf32> to vector<128x128xbf16>
    %c1 = arith.constant 1 : index
    %c0_28 = arith.constant 0 : index
    %c0_29 = arith.constant 0 : index
    %62 = vector.load %arg4[%c1, %c0_28, %c0_29] : memref<2x128x128xbf16, #tpu.memory_space<vmem>>, vector<1x128x128xbf16>
    %63 = vector.shape_cast %62 : vector<1x128x128xbf16> to vector<128x128xbf16>
    %cst_30 = arith.constant dense<0.000000e+00> : vector<128x128xf32>
    %64 = tpu.matmul %61, %63, %cst_30 {dimension_numbers = #tpu.dot_dimension_numbers<[1], [0], [0], [1], [0, 0, 1, 1], [], []>} : vector<128x128xbf16>, vector<128x128xbf16>, vector<128x128xf32> -> vector<128x128xf32>
    %c1_31 = arith.constant 1 : index
    %c0_32 = arith.constant 0 : index
    %c0_33 = arith.constant 0 : index
    %65 = vector.load %arg5[%c1_31, %c0_32, %c0_33] : memref<2x1x128xf32, #tpu.memory_space<vmem>>, vector<1x1x128xf32>
    %66 = vector.shape_cast %65 : vector<1x1x128xf32> to vector<1x128xf32>
    %67 = vector.broadcast %66 : vector<1x128xf32> to vector<128x128xf32>
    %68 = arith.addf %64, %67 : vector<128x128xf32>
    %cst_34 = arith.constant dense<0.000000e+00> : vector<128xf32>
    %69 = vector.multi_reduction <add>, %68, %cst_34 [1] : vector<128x128xf32> to vector<128xf32>
    %70 = vector.shape_cast %69 : vector<128xf32> to vector<128x1xf32>
    %cst_35 = arith.constant 1.280000e+02 : f32
    %71 = vector.broadcast %cst_35 : f32 to vector<128x1xf32>
    %72 = arith.divf %70, %71 : vector<128x1xf32>
    %73 = vector.broadcast %72 : vector<128x1xf32> to vector<128x128xf32>
    %74 = arith.subf %68, %73 : vector<128x128xf32>
    %75 = vector.broadcast %72 : vector<128x1xf32> to vector<128x128xf32>
    %76 = arith.subf %68, %75 : vector<128x128xf32>
    %77 = arith.mulf %74, %76 : vector<128x128xf32>
    %cst_36 = arith.constant dense<0.000000e+00> : vector<128xf32>
    %78 = vector.multi_reduction <add>, %77, %cst_36 [1] : vector<128x128xf32> to vector<128xf32>
    %79 = vector.shape_cast %78 : vector<128xf32> to vector<128x1xf32>
    %cst_37 = arith.constant 1.280000e+02 : f32
    %80 = vector.broadcast %cst_37 : f32 to vector<128x1xf32>
    %81 = arith.divf %79, %80 : vector<128x1xf32>
    %82 = vector.broadcast %72 : vector<128x1xf32> to vector<128x128xf32>
    %83 = arith.subf %68, %82 : vector<128x128xf32>
    %cst_38 = arith.constant 9.99999974E-6 : f32
    %84 = vector.broadcast %cst_38 : f32 to vector<128x1xf32>
    %85 = arith.addf %81, %84 : vector<128x1xf32>
    %86 = math.rsqrt %85 : vector<128x1xf32>
    %87 = vector.broadcast %86 : vector<128x1xf32> to vector<128x128xf32>
    %88 = arith.mulf %83, %87 : vector<128x128xf32>
    %c1_39 = arith.constant 1 : index
    %c0_40 = arith.constant 0 : index
    %c0_41 = arith.constant 0 : index
    %89 = vector.load %arg6[%c1_39, %c0_40, %c0_41] : memref<2x1x128xf32, #tpu.memory_space<vmem>>, vector<1x1x128xf32>
    %90 = vector.shape_cast %89 : vector<1x1x128xf32> to vector<1x128xf32>
    %91 = vector.broadcast %90 : vector<1x128xf32> to vector<128x128xf32>
    %92 = arith.mulf %88, %91 : vector<128x128xf32>
    %c1_42 = arith.constant 1 : index
    %c0_43 = arith.constant 0 : index
    %c0_44 = arith.constant 0 : index
    %93 = vector.load %arg7[%c1_42, %c0_43, %c0_44] : memref<2x1x128xf32, #tpu.memory_space<vmem>>, vector<1x1x128xf32>
    %94 = vector.shape_cast %93 : vector<1x1x128xf32> to vector<1x128xf32>
    %95 = vector.broadcast %94 : vector<1x128xf32> to vector<128x128xf32>
    %96 = arith.addf %92, %95 : vector<128x128xf32>
    %cst_45 = arith.constant 0.000000e+00 : f32
    %97 = vector.broadcast %cst_45 : f32 to vector<128x128xf32>
    %98 = arith.maximumf %96, %97 : vector<128x128xf32>
    %99 = vector.shape_cast %98 : vector<128x128xf32> to vector<8x16x128xf32>
    %cst_46 = arith.constant dense<0.000000e+00> : vector<8x128xf32>
    %100 = vector.multi_reduction <add>, %99, %cst_46 [1] : vector<8x16x128xf32> to vector<8x128xf32>
    %cst_47 = arith.constant 1.600000e+01 : f32
    %101 = vector.broadcast %cst_47 : f32 to vector<8x128xf32>
    %102 = arith.divf %100, %101 : vector<8x128xf32>
    %c0_48 = arith.constant 0 : index
    %c0_49 = arith.constant 0 : index
    %103 = vector.load %arg8[%c0_48, %c0_49] : memref<8x128xf32, #tpu.memory_space<vmem>>, vector<8x128xf32>
    tpu.vector_store %arg8[%c0_48, %c0_49], %102 {strides = array<i32>} : memref<8x128xf32, #tpu.memory_space<vmem>>, vector<8x128xf32>,
    return
  }
  func.func @transform_0(%arg0: i32) -> (i32, i32, i32) {
    %c0_i32 = arith.constant 0 : i32
    %c0_i32_0 = arith.constant 0 : i32
    %c0_i32_1 = arith.constant 0 : i32
    return %arg0, %c0_i32, %c0_i32_0 : i32, i32, i32
  }
  func.func @transform_1(%arg0: i32) -> (i32, i32, i32) {
    %c0_i32 = arith.constant 0 : i32
    %c0_i32_0 = arith.constant 0 : i32
    %c0_i32_1 = arith.constant 0 : i32
    return %arg0, %c0_i32, %c0_i32_0 : i32, i32, i32
  }
  func.func @transform_2(%arg0: i32) -> (i32, i32, i32) {
    %c0_i32 = arith.constant 0 : i32
    %c0_i32_0 = arith.constant 0 : i32
    %c0_i32_1 = arith.constant 0 : i32
    return %arg0, %c0_i32, %c0_i32_0 : i32, i32, i32
  }
  func.func @transform_3(%arg0: i32) -> (i32, i32, i32) {
    %c0_i32 = arith.constant 0 : i32
    %c0_i32_0 = arith.constant 0 : i32
    %c0_i32_1 = arith.constant 0 : i32
    %c0_i32_2 = arith.constant 0 : i32
    return %c0_i32, %c0_i32_0, %c0_i32_1 : i32, i32, i32
  }
  func.func @transform_4(%arg0: i32) -> (i32, i32, i32) {
    %c0_i32 = arith.constant 0 : i32
    %c0_i32_0 = arith.constant 0 : i32
    %c0_i32_1 = arith.constant 0 : i32
    %c0_i32_2 = arith.constant 0 : i32
    return %c0_i32, %c0_i32_0, %c0_i32_1 : i32, i32, i32
  }
  func.func @transform_5(%arg0: i32) -> (i32, i32, i32) {
    %c0_i32 = arith.constant 0 : i32
    %c0_i32_0 = arith.constant 0 : i32
    %c0_i32_1 = arith.constant 0 : i32
    %c0_i32_2 = arith.constant 0 : i32
    return %c0_i32, %c0_i32_0, %c0_i32_1 : i32, i32, i32
  }
  func.func @transform_6(%arg0: i32) -> (i32, i32, i32) {
    %c0_i32 = arith.constant 0 : i32
    %c0_i32_0 = arith.constant 0 : i32
    %c0_i32_1 = arith.constant 0 : i32
    %c0_i32_2 = arith.constant 0 : i32
    return %c0_i32, %c0_i32_0, %c0_i32_1 : i32, i32, i32
  }
  func.func @transform_7(%arg0: i32) -> (i32, i32) {
    %c0_i32 = arith.constant 0 : i32
    %c0_i32_0 = arith.constant 0 : i32
    return %arg0, %c0_i32 : i32, i32
  }
}

</mosaic_0001>

<bundles_post_ra>
// kernel: tpu_custom_call.1
= control target key start
LH: loop header
LB: loop body
LE: loop exit
PB: predicated region body
PF: predicated region fallthrough
CT: control target
= control target key end

     0   :  { %12 = vsyncpa [#allocation3], 0  ;;  %s3746_s0 = inlined_call_operand.vmem [shape: bf16[16,16,16], index: 0, kind: input, shape index: {}]   ;;  %s3747_s1 = inlined_call_operand.vmem [shape: f32[16,16,1], index: 1, kind: input, shape index: {}]   ;;  %s3748_s2 = inlined_call_operand.vmem [shape: bf16[16,16,128], index: 2, kind: input, shape index: {}]   ;;  %s3749_s3 = inlined_call_operand.hbm [shape: bf16[2,128,128], index: 3, kind: input, shape index: {}]   ;;  %s3750_s4 = inlined_call_operand.vmem [shape: f32[2,1,128], index: 4, kind: input, shape index: {}]   ;;  %s3751_s5 = inlined_call_operand.vmem [shape: f32[2,1,128], index: 5, kind: input, shape index: {}]   ;;  %s3752_s6 = inlined_call_operand.vmem [shape: f32[2,1,128], index: 6, kind: input, shape index: {}]   ;;  %s3753_s7 = inlined_call_operand.hbm [shape: f32[16,128], index: 7, kind: output, shape index: {}]  }
   0x1   :  { %13 = vsyncpa [#allocation4], 0 }
   0x2   :  { %15 = vsyncpa [#allocation4 + $0x1], 0  ;;  %s2943_s24 = smov 0   ;;  %s2945_s25 = smov 0  }
   0x3   :  { %s2947_s26 = smov 0   ;;  %s2949_s27 = smov 0  }
   0x4 LB: > { %s2964_s28 = sadd.s32 4294967295, %s2894_s27   ;;  %s2324_s29 = sadd.s32 4294967294, %s2894_s27   ;;  %s2894_s27 = sphi %s2949_s27, %s3761_s27   ;;  %s2890_s26 = sphi %s2947_s26, %s3760_s26   ;;  %s2886_s25 = sphi %s2945_s25, %s3759_s25   ;;  %s2882_s24 = sphi %s2943_s24, %s3758_s24  }
   0x5   : > { %s2968_s30 = sadd.s32 1, %s2894_s27   ;;  %s190_s8 = sadd.s32 1, %s2890_s26 }
   0x6   : > { %s187_s9 = ssub.s32 %s2894_s27, %s2968_s30  ;;  %p200_p0 = scmp.ne.s32.totalorder %s2890_s26, %s2886_s25 }
   0x7   : > { %p188_p1 = scmp.eq.s32.totalorder %s187_s9, 0  ;;  %p201_p2 = scmp.eq.s32.totalorder %s2964_s28, 1 }
   0x8   : > { %p206_p3 = scmp.ne.s32.totalorder %s2886_s25, %s2882_s24  ;;  %p207_p4 = scmp.eq.s32.totalorder %s2324_s29, 1 }
   0x9   : > { %s2979_s10 = scalar_select %p188_p1, %s2890_s26, %s190_s8  }
   0xa   : > { %p2981_p5 = por %p201_p2, %p200_p0  ;;  %p2985_p6 = por %p207_p4, %p206_p3 }
   0xb   : > { %p2325_p7 = scmp.ge.s32.totalorder %s2894_s27, 1  ;;  %p214_p8 = scmp.lt.s32.totalorder %s2894_s27, 3 }
   0xc   : > { %s3755_s12 = scalar_select %p2985_p6, 1, 0 }
   0xd   : > { %p2673_p9 = scmp.eq.s32.totalorder %s2964_s28, 0  ;;  %p2992_p10 = pnand %p2325_p7, %p214_p8 }
   0xe   : > { %s2896_s14 = smov [#allocation2]  }
   0xf   : > { %s226_s15 = sshll.u32 %s2896_s14, 4  ;;  %p2665_p11 = pneg %p2992_p10  ;;  %s227_s15 = int_to_ptr.vmem [resolvable:$true] %s226_s15 }
  0x10   : > { %s2815_s16 = scalar_lea.vmem %s227_s15, 2048  ;;  %p2823_p3 = scmp.lt.s32.totalorder %s227_s15, %s227_s15 }
  0x11   : > { %p2666_p12 = pnand %p2673_p9, %p2665_p11  ;;  %p2816_p0 = scmp.ne.s32.totalorder %s227_s15, %s2815_s16 }
  0x12   : > { %p2824_p4 = scmp.lt.s32.totalorder %s2815_s16, %s2815_s16 }
  0x13   : > { %p2806_p13 = pneg %p2666_p12 }
  0x14   : > { %p2825_p6 = por %p2824_p4, %p2823_p3 }
  0x15   : > { %p2818_p1 = pnand %p2816_p0, %p2806_p13 }
  0x17   : > { %p2819_p2 = pneg %p2818_p1 }
  0x19   : > { %p2826_p7 = pnand %p2825_p6, %p2819_p2 }
  0x1b   : > { %2829 = shalt.err (!%p2826_p7)
}
  0x1c   : > { %s2897_s17 = smov 64   ;;  %s2898_s18 = smov 4  }
  0x1d   : > { %2668 = dma.hbm_to_vmem [thread:$0]  (!%p2666_p12), %s3749_s3, 2048, %s227_s15, [#allocation3], %s2897_s17, %s2897_s17, %s2898_s18  }
  0x1e   : > { %281 = sbr.rel (%p2992_p10) target bundleno = 1701 (0x6a5), region = 48 }
  0x23   : > { %2873 = dma.done.wait (%p2673_p9), [#allocation3], 2048  }
  0x24   : > { %2875 = vsyncadd (%p2673_p9), [#allocation3], 4294965248  ;;  %s2331_s21 = sshll.u32 %s2964_s28, 3  ;;  %v2899_v0 = vmov 0   ;;  %v2900_v5 = vmov 0.0   ;;  %vm2901_vm0 = vmmov 0  }
  0x25   : > { %2715 = vset.pattern.permute.xlu1 %v2899_v0  ;;  %2714 = vset.pattern.permute.xlu0 %v2899_v0  ;;  %p327_p6 = scmp.lt.s32.totalorder %s2331_s21, 15  ;;  %vm521_vm1 = vcmask 130048   ;;  %vm2199_vm2 = vcmask 1041409   ;;  %s323_s17 = sand.u32 1, %s2886_s25   ;;  %vm2201_vm3 = vcmask 1042434   ;;  %vm2203_vm4 = vcmask 1043459  }
  0x26   : > { %2499 = vmatprep.subr.bf16.mxu0 %v2900_v5  ;;  %2541 = vmatprep.subr.bf16.mxu1 %v2900_v5  ;;  %vm2205_vm5 = vcmask 1044484   ;;  %vm2207_vm6 = vcmask 1045509   ;;  %vm2209_vm7 = vcmask 1046534   ;;  %s2390_s19 = sshll.u32 %s2964_s28, 7  ;;  %vm2211_vm8 = vcmask 1047559   ;;  %s2902_s28 = smov [#allocation5]  }
  0x27   : > { %s3763_s21 = smov (!%p327_p6, %s2331_s21), 15  ;;  %2501 = vmatprep.mubr.msk.bf16.mxu0 %vm2901_vm0, %v2900_v5  ;;  %2543 = vmatprep.mubr.msk.bf16.mxu1 %vm2901_vm0, %v2900_v5  ;;  %s3709_s29 = scalar_lea.hbm %s3753_s7, %s2390_s19 }
  0x28   : > { %s2394_s22 = sshll.u32 %s3763_s21, 4  ;;  %s2393_s9 = sshll.u32 %s3763_s21, 3 }
  0x29   : > { %s3016_s8 = scalar_lea.vmem %s3747_s1, %s2394_s22  ;;  %s3030_s15 = scalar_lea.vmem %s3746_s0, %s2393_s9 }
  0x2a   : > { %v366_v1 = vld [vmem:[%s3016_s8 + $0x10] sm:$0xff]  ;;  %v364_v2 = vld [vmem:[%s3016_s8] sm:$0xff]  ;;  %v367_v3 = vld [vmem:[%s3016_s8 + $0x18] sm:$0xff]  ;;  %s3053_s18 = scalar_lea.vmem %s3748_s2, %s2393_s9  ;;  %s2834_s13 = sshll.u32 %s2902_s28, 4  ;;  %s2835_s13 = int_to_ptr.vmem [resolvable:$false] %s2834_s13 }
  0x2b   : > { %424 = vperm.xlu1 %2715, %v366_v1   ;;  %414 = vperm.xlu0 %2714, %v364_v2   ;;  %v365_v4 = vld [vmem:[%s3016_s8 + $0x8] sm:$0xff]  ;;  %v368_v7 = vld [vmem:[%s3016_s8 + $0x20] sm:$0xff]  ;;  %v371_v8 = vld [vmem:[%s3016_s8 + $0x38] sm:$0xff]  ;;  %s2836_s14 = scalar_lea.vmem %s2835_s13, 256 }
  0x2c   : > { %v369_v6 = vld [vmem:[%s3016_s8 + $0x28] sm:$0xff]  ;;  %v370_v9 = vld [vmem:[%s3016_s8 + $0x30] sm:$0xff]  ;;  %v372_v11 = vld [vmem:[%s3016_s8 + $0x40] sm:$0xff] }
  0x2d   : > { %v373_v10 = vld [vmem:[%s3016_s8 + $0x48] sm:$0xff]  ;;  %v375_v12 = vld [vmem:[%s3016_s8 + $0x58] sm:$0xff]  ;;  %v374_v13 = vld [vmem:[%s3016_s8 + $0x50] sm:$0xff] }
  0x2e   : > { %v377_v14 = vld [vmem:[%s3016_s8 + $0x68] sm:$0xff]  ;;  %v376_v15 = vld [vmem:[%s3016_s8 + $0x60] sm:$0xff]  ;;  %v379_v16 = vld [vmem:[%s3016_s8 + $0x78] sm:$0xff] }
  0x2f   : > { %429 = vperm.xlu1 %2715, %v367_v3   ;;  %419 = vperm.xlu0 %2714, %v365_v4   ;;  %v378_v17 = vld [vmem:[%s3016_s8 + $0x70] sm:$0xff]  ;;  %v2428_v18 = vld [vmem:[%s3053_s18 + $0x8] sm:$0xff]   ;;  %v2397_v19 = vld [vmem:[%s3053_s18] sm:$0xff]   ;;  %s2216_s8 = scalar_lea.sflag [#allocation4], %s323_s17 }
  0x30   : > { %v2402_v22 = vunpack.c.l.bf16 %v2428_v18  ;;  %v2403_v23 = vunpack.c.h.bf16 %v2428_v18  ;;  %v2398_v24 = vunpack.c.l.bf16 %v2397_v19  ;;  %v2399_v25 = vunpack.c.h.bf16 %v2397_v19  ;;  %v2429_v33 = vld [vmem:[%s3053_s18 + $0x10] sm:$0xff]   ;;  %v3085_v36 = vld [vmem:[%s3030_s15] sm:$0xff]   ;;  %v2430_v44 = vld [vmem:[%s3053_s18 + $0x18] sm:$0xff]  }
  0x31   : > { %v2407_v38 = vunpack.c.h.bf16 %v2429_v33  ;;  %v2406_v39 = vunpack.c.l.bf16 %v2429_v33  ;;  %v3111_v47 = vld [vmem:[%s3030_s15 + $0x8] sm:$0xff]   ;;  %v2411_v48 = vunpack.c.h.bf16 %v2430_v44  ;;  %v2410_v49 = vunpack.c.l.bf16 %v2430_v44  ;;  %v2434_v53 = vld [vmem:[%s3053_s18 + $0x38] sm:$0xff]   ;;  %v2431_v56 = vld [vmem:[%s3053_s18 + $0x20] sm:$0xff]  }
  0x32   : > { %v3137_v59 = vld [vmem:[%s3030_s15 + $0x10] sm:$0xff]   ;;  %v2426_v60 = vunpack.c.l.bf16 %v2434_v53  ;;  %v2427_v61 = vunpack.c.h.bf16 %v2434_v53  ;;  %v2415_v62 = vunpack.c.h.bf16 %v2431_v56  ;;  %v2414_v63 = vunpack.c.l.bf16 %v2431_v56  ;;  %v3191_v18 = vld [vmem:[%s3030_s15 + $0x20] sm:$0xff]   ;;  %v2724_v33 = vld [vmem:[#allocation2 + $0x38] sm:$0xff]  }
  0x33   : > { %439 = vperm.xlu1 %2715, %v369_v6   ;;  %434 = vperm.xlu0 %2714, %v368_v7   ;;  %v2726_v44 = vld [vmem:[#allocation2 + $0x28] sm:$0xff]   ;;  %v2731_v56 = vld [vmem:[#allocation2] sm:$0xff]  }
  0x34   : > { %v2730_v53 = vld [vmem:[#allocation2 + $0x8] sm:$0xff]  }
  0x37   : > { %449 = vperm.xlu1 %2715, %v371_v8   ;;  %444 = vperm.xlu0 %2714, %v370_v9   ;;  %v2432_v9 = vld [vmem:[%s3053_s18 + $0x28] sm:$0xff]  }
  0x3b   : > { %459 = vperm.xlu1 %2715, %v373_v10   ;;  %454 = vperm.xlu0 %2714, %v372_v11   ;;  %v3166_v10 = vld [vmem:[%s3030_s15 + $0x18] sm:$0xff]  }
  0x3c   : > { %v3169_v11 = vld [vmem:[%s3030_s15 + $0x38] sm:$0xff]  }
  0x3f   : > { %469 = vperm.xlu1 %2715, %v375_v12   ;;  %464 = vperm.xlu0 %2714, %v374_v13   ;;  %v2419_v12 = vunpack.c.h.bf16 %v2432_v9  ;;  %v2418_v13 = vunpack.c.l.bf16 %v2432_v9 }
  0x43   : > { %479 = vperm.xlu1 %2715, %v377_v14   ;;  %474 = vperm.xlu0 %2714, %v376_v15  }
  0x47   : > { %489 = vperm.xlu1 %2715, %v379_v16   ;;  %484 = vperm.xlu0 %2714, %v378_v17   ;;  %v2433_v17 = vld [vmem:[%s3053_s18 + $0x30] sm:$0xff]   ;;  %s3702_s18 = sshll.u32 %s323_s17, 3 }
  0x48   : > { %v2423_v19 = vunpack.c.h.bf16 %v2433_v17  ;;  %s325_s20 = scalar_lea.vmem [#allocation5], %s3702_s18 }
  0x49   : > { %s2229_s21 = sshll.u32 %s325_s20, 4  ;;  %s2230_s21 = int_to_ptr.vmem [resolvable:$true] %s2229_s21 }
  0x4a   : > { %s2830_s9 = scalar_lea.vmem %s2230_s21, 128  ;;  %p2837_p11 = scmp.lt.s32.totalorder %s2230_s21, %s2835_s13 }
  0x4b   : > { %p2831_p8 = scmp.ne.s32.totalorder %s2230_s21, %s2830_s9  ;;  %p2838_p12 = scmp.lt.s32.totalorder %s2836_s14, %s2830_s9 }
  0x4d   : > { %p2832_p9 = pnand %p2831_p8, %p2981_p5  ;;  %p2839_p13 = por %p2838_p12, %p2837_p11 }
  0x4f   : > { %p2833_p10 = pneg %p2832_p9 }
  0x51   : > { %p2840_p0 = pnand %p2839_p13, %p2833_p10 }
  0xa6   : > { %v3057_v20 = vpop.permute.xlu1 %424  ;;  %v3059_v21 = vpop.permute.xlu0 %414 }
  0xa7   : > { %v3066_v28 = vmul.f32 %v2402_v22, %v3057_v20  ;;  %v3072_v30 = vmul.f32 %v2398_v24, %v3059_v21  ;;  %v2422_v22 = vunpack.c.l.bf16 %v2433_v17 }
  0xaa   : > { %v3061_v26 = vpop.permute.xlu1 %429  ;;  %v3063_v27 = vpop.permute.xlu0 %419 }
  0xab   : > { %v3069_v29 = vmul.f32 %v2403_v23, %v3061_v26  ;;  %v3075_v31 = vmul.f32 %v2399_v25, %v3063_v27 }
  0xad   : > { %v508_v32 = vpack.c.bf16 %v3075_v31, %v3072_v30  ;;  %v509_v37 = vpack.c.bf16 %v3069_v29, %v3066_v28 }
  0xae   : > { %v3080_v34 = vpop.permute.xlu1 %439  ;;  %v3082_v35 = vpop.permute.xlu0 %434 }
  0xaf   : > { %2500 = vmatpush3.bf16.msra.mxu0 %v508_v32  ;;  %v3100_v42 = vmul.f32 %v2407_v38, %v3080_v34  ;;  %v3103_v43 = vmul.f32 %v2406_v39, %v3082_v35  ;;  %v3207_v32 = vld [vmem:[%s3030_s15 + $0x28] sm:$0xff]   ;;  %v3216_v38 = vld [vmem:[%s3030_s15 + $0x30] sm:$0xff]  }
  0xb0   : > { %2505 = vmatprep.subr.bf16.mxu0 %v2900_v5  ;;  %v2725_v39 = vld [vmem:[#allocation2 + $0x30] sm:$0xff]  }
  0xb1   : > { %v510_v50 = vpack.c.bf16 %v3100_v42, %v3103_v43 }
  0xb2   : > { %v3090_v40 = vpop.permute.xlu1 %449  ;;  %v3092_v41 = vpop.permute.xlu0 %444  ;;  %2502 = vmatmul.mubr.msk.bf16.vlgmr.msra.gmra.mxu0 %vm521_vm1, %v3085_v36 }
  0xb3   : > { %2506 = vmatpush3.bf16.msra.mxu0 %v509_v37  ;;  %2507 = vmatprep.mubr.msk.bf16.mxu0 %vm2901_vm0, %v2900_v5  ;;  %v3126_v54 = vmul.f32 %v2411_v48, %v3090_v40  ;;  %v3129_v55 = vmul.f32 %v2410_v49, %v3092_v41  ;;  %v2727_v48 = vld [vmem:[#allocation2 + $0x20] sm:$0xff]   ;;  %v2728_v49 = vld [vmem:[#allocation2 + $0x18] sm:$0xff]  }
  0xb4   : > { %2511 = vmatprep.subr.bf16.mxu0 %v2900_v5 }
  0xb5   : > { %v511_v0 = vpack.c.bf16 %v3126_v54, %v3129_v55 }
  0xb6   : > { %v3106_v45 = vpop.permute.xlu1 %459  ;;  %v3108_v46 = vpop.permute.xlu0 %454 }
  0xb7   : > { %v3157_v6 = vmul.f32 %v2415_v62, %v3106_v45  ;;  %v3160_v7 = vmul.f32 %v2414_v63, %v3108_v46 }
  0xb9   : > { %v512_v14 = vpack.c.bf16 %v3157_v6, %v3160_v7 }
  0xba   : > { %v3115_v51 = vpop.permute.xlu1 %469  ;;  %v3117_v52 = vpop.permute.xlu0 %464  ;;  %2508 = vmatmul.mubr.msk.bf16.vlgmr.msra.gmra.mxu0 %vm521_vm1, %v3111_v47 }
  0xbb   : > { %2512 = vmatpush3.bf16.msra.mxu0 %v510_v50  ;;  %2513 = vmatprep.mubr.msk.bf16.mxu0 %vm2901_vm0, %v2900_v5  ;;  %v3184_v15 = vmul.f32 %v2419_v12, %v3115_v51  ;;  %v3187_v16 = vmul.f32 %v2418_v13, %v3117_v52  ;;  %v2729_v50 = vld [vmem:[#allocation2 + $0x10] sm:$0xff]  }
  0xbc   : > { %2517 = vmatprep.subr.bf16.mxu0 %v2900_v5 }
  0xbd   : > { %v513_v23 = vpack.c.bf16 %v3184_v15, %v3187_v16 }
  0xbe   : > { %v3132_v57 = vpop.permute.xlu1 %479  ;;  %v3134_v58 = vpop.permute.xlu0 %474 }
  0xbf   : > { %v3201_v24 = vmul.f32 %v2423_v19, %v3132_v57  ;;  %v3204_v25 = vmul.f32 %v2422_v22, %v3134_v58 }
  0xc1   : > { %v514_v37 = vpack.c.bf16 %v3201_v24, %v3204_v25 }
  0xc2   : > { %v3141_v1 = vpop.permute.xlu1 %489  ;;  %v3143_v2 = vpop.permute.xlu0 %484  ;;  %2514 = vmatmul.mubr.msk.bf16.vlgmr.msra.gmra.mxu0 %vm521_vm1, %v3137_v59 }
  0xc3   : > { %2518 = vmatpush3.bf16.msra.mxu0 %v511_v0  ;;  %v3148_v3 = vmul.f32 %v2426_v60, %v3143_v2  ;;  %v3151_v4 = vmul.f32 %v2427_v61, %v3141_v1  ;;  %2519 = vmatprep.mubr.msk.bf16.mxu0 %vm2901_vm0, %v2900_v5 }
  0xc4   : > { %2523 = vmatprep.subr.bf16.mxu0 %v2900_v5 }
  0xc5   : > { %v515_v8 = vpack.c.bf16 %v3151_v4, %v3148_v3 }
  0xc7   : > { %2542 = vmatpush3.bf16.msra.mxu1 %v515_v8 }
  0xc8   : > { %2579 = vmatprep.subr.bf16.mxu1 %v2900_v5 }
  0xca   : > { %2520 = vmatmul.mubr.msk.bf16.vlgmr.msra.gmra.mxu0 %vm521_vm1, %v3166_v10  ;;  %2544 = vmatmul.mubr.msk.bf16.vlgmr.msra.gmra.mxu1 %vm521_vm1, %v3169_v11 }
  0xcb   : > { %2524 = vmatpush3.bf16.msra.mxu0 %v512_v14  ;;  %2525 = vmatprep.mubr.msk.bf16.mxu0 %vm2901_vm0, %v2900_v5 }
  0xcc   : > { %2529 = vmatprep.subr.bf16.mxu0 %v2900_v5  ;;  %2581 = vmatprep.mubr.msk.bf16.mxu1 %vm2901_vm0, %v2900_v5 }
  0xd2   : > { %2526 = vmatmul.mubr.msk.bf16.vlgmr.msra.gmra.mxu0 %vm521_vm1, %v3191_v18 }
  0xd3   : > { %2530 = vmatpush3.bf16.msra.mxu0 %v513_v23  ;;  %2531 = vmatprep.mubr.msk.bf16.mxu0 %vm2901_vm0, %v2900_v5 }
  0xd4   : > { %2535 = vmatprep.subr.bf16.mxu0 %v2900_v5 }
  0xda   : > { %2532 = vmatmul.mubr.msk.bf16.vlgmr.msra.gmra.mxu0 %vm521_vm1, %v3207_v32 }
  0xdb   : > { %2536 = vmatpush3.bf16.msra.mxu0 %v514_v37  ;;  %2537 = vmatprep.mubr.msk.bf16.mxu0 %vm2901_vm0, %v2900_v5 }
  0xdc   : > { %2547 = vmatprep.subr.bf16.mxu0 %v2724_v33 }
  0xe2   : > { %2538 = vmatmul.mubr.msk.bf16.vlgmr.msra.gmra.mxu0 %vm521_vm1, %v3216_v38 }
  0xe3   : > { %2548 = vmatpush3.bf16.msra.mxu0 %v2724_v33 }
  0xe4   : > { %2549 = vmatprep.subr.bf16.mxu0 %v2725_v39 }
  0xe7   : > { %2550 = vmatpush3.bf16.msra.mxu0 %v2725_v39 }
  0xe8   : > { %2551 = vmatprep.subr.bf16.mxu0 %v2726_v44 }
  0xeb   : > { %2552 = vmatpush3.bf16.msra.mxu0 %v2726_v44 }
  0xec   : > { %2553 = vmatprep.subr.bf16.mxu0 %v2727_v48 }
  0xef   : > { %2554 = vmatpush3.bf16.msra.mxu0 %v2727_v48 }
  0xf0   : > { %2555 = vmatprep.subr.bf16.mxu0 %v2728_v49 }
  0xf3   : > { %2556 = vmatpush3.bf16.msra.mxu0 %v2728_v49 }
  0xf4   : > { %2557 = vmatprep.subr.bf16.mxu0 %v2729_v50 }
  0xf7   : > { %2558 = vmatpush3.bf16.msra.mxu0 %v2729_v50 }
  0xf8   : > { %2559 = vmatprep.subr.bf16.mxu0 %v2730_v53 }
  0xfb   : > { %2560 = vmatpush3.bf16.msra.mxu0 %v2730_v53 }
  0xfc   : > { %2561 = vmatprep.subr.bf16.mxu0 %v2731_v56 }
  0xff   : > { %2562 = vmatpush3.bf16.msra.mxu0 %v2731_v56 }
 0x100   : > { %2621 = vmatprep.subr.bf16.mxu0 %v2900_v5 }
 0x172   : > { %v559_v60 = vpop.f32.mrf.mxu0 }
 0x173   : > { %v560_v62 = vadd.f32 %v559_v60, %v3072_v30 }
 0x174   : > { %v2503_v61 = vpop.f32.mrf.mxu0 }
 0x175   : > { %v909_v9 = vmul.f32 %v560_v62, %v3059_v21 }
 0x176   : > { %v562_v63 = vpop.f32.mrf.mxu0 }
 0x177   : > { %v563_v0 = vadd.f32 %v562_v63, %v3075_v31 }
 0x178   : > { %v2504_v8 = vpop.f32.mrf.mxu0 }
 0x179   : > { %v910_v12 = vmul.f32 %v563_v0, %v3063_v27 }
 0x17a   : > { %v608_v13 = vpop.f32.mrf.mxu0 }
 0x17b   : > { %v925_v14 = vpack.c.bf16 %v910_v12, %v909_v9  ;;  %v609_v19 = vadd.f32 %v608_v13, %v3066_v28 }
 0x17c   : > { %v2509_v17 = vpop.f32.mrf.mxu0 }
 0x17d   : > { %2563 = vmatprep.mubr.bf16.mxu0 %v925_v14  ;;  %v911_v30 = vmul.f32 %v609_v19, %v3057_v20 }
 0x17e   : > { %v611_v22 = vpop.f32.mrf.mxu0 }
 0x17f   : > { %v612_v23 = vadd.f32 %v611_v22, %v3069_v29 }
 0x180   : > { %v2510_v33 = vpop.f32.mrf.mxu0 }
 0x181   : > { %v912_v37 = vmul.f32 %v612_v23, %v3061_v26 }
 0x182   : > { %v657_v31 = vpop.f32.mrf.mxu0 }
 0x183   : > { %v926_v39 = vpack.c.bf16 %v912_v37, %v911_v30  ;;  %v658_v48 = vadd.f32 %v657_v31, %v3103_v43 }
 0x184   : > { %v2515_v44 = vpop.f32.mrf.mxu0 }
 0x185   : > { %2564 = vmatmul.mubr.bf16.vlgmr.msra.gmra.mxu0 %v926_v39  ;;  %v913_v28 = vmul.f32 %v658_v48, %v3082_v35 }
 0x186   : > { %v660_v49 = vpop.f32.mrf.mxu0 }
 0x187   : > { %v661_v50 = vadd.f32 %v660_v49, %v3100_v42 }
 0x188   : > { %v2516_v53 = vpop.f32.mrf.mxu0 }
 0x189   : > { %v914_v56 = vmul.f32 %v661_v50, %v3080_v34 }
 0x18a   : > { %v706_v29 = vpop.f32.mrf.mxu0  ;;  %v902_v60 = vpop.f32.mrf.mxu1 }
 0x18b   : > { %v927_v61 = vpack.c.bf16 %v914_v56, %v913_v28  ;;  %v707_v0 = vadd.f32 %v706_v29, %v3129_v55 }
 0x18c   : > { %v2521_v62 = vpop.f32.mrf.mxu0  ;;  %v2545_v63 = vpop.f32.mrf.mxu1 }
 0x18d   : > { %2567 = vmatprep.mubr.bf16.mxu0 %v927_v61  ;;  %v915_v42 = vmul.f32 %v707_v0, %v3092_v41  ;;  %v903_v63 = vadd.f32 %v902_v60, %v3148_v3 }
 0x18e   : > { %v709_v8 = vpop.f32.mrf.mxu0  ;;  %v905_v9 = vpop.f32.mrf.mxu1 }
 0x18f   : > { %v710_v43 = vadd.f32 %v709_v8, %v3126_v54  ;;  %v906_v29 = vadd.f32 %v905_v9, %v3151_v4 }
 0x190   : > { %v2522_v12 = vpop.f32.mrf.mxu0  ;;  %v2546_v13 = vpop.f32.mrf.mxu1 }
 0x191   : > { %v916_v14 = vmul.f32 %v710_v43, %v3090_v40  ;;  %v923_v13 = vmul.f32 %v903_v63, %v3143_v2 }
 0x192   : > { %v755_v17 = vpop.f32.mrf.mxu0 }
 0x193   : > { %v928_v19 = vpack.c.bf16 %v916_v14, %v915_v42  ;;  %v756_v23 = vadd.f32 %v755_v17, %v3160_v7 }
 0x194   : > { %v2527_v22 = vpop.f32.mrf.mxu0 }
 0x195   : > { %2568 = vmatmul.mubr.bf16.gmra.mxu0 %v928_v19  ;;  %v917_v37 = vmul.f32 %v756_v23, %v3108_v46 }
 0x196   : > { %v758_v33 = vpop.f32.mrf.mxu0 }
 0x197   : > { %v759_v55 = vadd.f32 %v758_v33, %v3157_v6 }
 0x198   : > { %v2528_v30 = vpop.f32.mrf.mxu0 }
 0x199   : > { %v918_v54 = vmul.f32 %v759_v55, %v3106_v45 }
 0x19a   : > { %v804_v31 = vpop.f32.mrf.mxu0 }
 0x19b   : > { %v929_v39 = vpack.c.bf16 %v918_v54, %v917_v37  ;;  %v805_v48 = vadd.f32 %v804_v31, %v3187_v16 }
 0x19c   : > { %v2533_v44 = vpop.f32.mrf.mxu0 }
 0x19d   : > { %2571 = vmatprep.mubr.bf16.mxu0 %v929_v39  ;;  %v919_v7 = vmul.f32 %v805_v48, %v3117_v52 }
 0x19e   : > { %v807_v49 = vpop.f32.mrf.mxu0 }
 0x19f   : > { %v808_v50 = vadd.f32 %v807_v49, %v3184_v15  ;;  %v924_v15 = vmul.f32 %v906_v29, %v3141_v1 }
 0x1a0   : > { %v2534_v53 = vpop.f32.mrf.mxu0 }
 0x1a1   : > { %v920_v28 = vmul.f32 %v808_v50, %v3115_v51  ;;  %v932_v4 = vpack.c.bf16 %v924_v15, %v923_v13 }
 0x1a2   : > { %v853_v6 = vpop.f32.mrf.mxu0 }
 0x1a3   : > { %v930_v56 = vpack.c.bf16 %v920_v28, %v919_v7  ;;  %v854_v62 = vadd.f32 %v853_v6, %v3204_v25 }
 0x1a4   : > { %v2539_v61 = vpop.f32.mrf.mxu0 }
 0x1a5   : > { %2572 = vmatmul.mubr.bf16.gmra.mxu0 %v930_v56  ;;  %v921_v43 = vmul.f32 %v854_v62, %v3134_v58 }
 0x1a6   : > { %v856_v16 = vpop.f32.mrf.mxu0 }
 0x1a7   : > { %v857_v0 = vadd.f32 %v856_v16, %v3201_v24  ;;  %v2356_v24 = vld [vmem:[%s3750_s4] ss:$0 sm:$0xff] }
 0x1a8   : > { %v2540_v8 = vpop.f32.mrf.mxu0 }
 0x1a9   : > { %v922_v12 = vmul.f32 %v857_v0, %v3132_v57 }
 0x1ab   : > { %v931_v42 = vpack.c.bf16 %v922_v12, %v921_v43 }
 0x1ad   : > { %2575 = vmatprep.mubr.bf16.mxu0 %v931_v42 }
 0x1ae   : > { %2576 = vmatmul.mubr.bf16.gmra.mxu0 %v932_v4 }
 0x1af   : > { %2623 = vmatprep.mubr.msk.bf16.mxu0 %vm2901_vm0, %v2900_v5 }
 0x245   : > { %v2565_v3 = vpop.f32.mrf.mxu0 }
 0x246   : > { %v1047_v17 = vadd.f32 %v2565_v3, %v2356_v24 }
 0x247   : > { %v1038_v25 = vpop.f32.mrf.mxu0 }
 0x248   : > { %v1039_v60 = vadd.f32 %v2356_v24, %v1038_v25 }
 0x249   : > { %v2566_v9 = vpop.f32.mrf.mxu0 }
 0x24a   : > { %1101 = vadd.xlane.f32.xlu0 %v1039_v60  ;;  %v1050_v22 = vadd.f32 %v2566_v9, %v2356_v24 }
 0x24b   : > { %v1041_v14 = vpop.f32.mrf.mxu0 }
 0x24c   : > { %v1042_v19 = vadd.f32 %v2356_v24, %v1041_v14 }
 0x24e   : > { %1103 = vadd.xlane.f32.xlu1 %v1042_v19  ;;  %1105 = vadd.xlane.f32.xlu0 %v1047_v17 }
 0x252   : > { %1107 = vadd.xlane.f32.xlu0 %v1050_v22 }
 0x255   : > { %v2569_v23 = vpop.f32.mrf.mxu0 }
 0x256   : > { %v1063_v54 = vadd.f32 %v2569_v23, %v2356_v24 }
 0x257   : > { %v1054_v33 = vpop.f32.mrf.mxu0 }
 0x258   : > { %v1055_v55 = vadd.f32 %v2356_v24, %v1054_v33 }
 0x259   : > { %v2570_v30 = vpop.f32.mrf.mxu0 }
 0x25a   : > { %1109 = vadd.xlane.f32.xlu1 %v1055_v55  ;;  %v1066_v39 = vadd.f32 %v2570_v30, %v2356_v24 }
 0x25b   : > { %v1057_v37 = vpop.f32.mrf.mxu0 }
 0x25c   : > { %v1058_v31 = vadd.f32 %v2356_v24, %v1057_v37 }
 0x25e   : > { %1113 = vadd.xlane.f32.xlu1 %v1063_v54  ;;  %1111 = vadd.xlane.f32.xlu0 %v1058_v31 }
 0x262   : > { %1115 = vadd.xlane.f32.xlu0 %v1066_v39 }
 0x265   : > { %v2573_v44 = vpop.f32.mrf.mxu0 }
 0x266   : > { %v3261_v7 = vadd.f32 %v2573_v44, %v2356_v24 }
 0x267   : > { %v1070_v48 = vpop.f32.mrf.mxu0 }
 0x268   : > { %v3258_v49 = vadd.f32 %v2356_v24, %v1070_v48 }
 0x269   : > { %v2574_v50 = vpop.f32.mrf.mxu0 }
 0x26a   : > { %1117 = vadd.xlane.f32.xlu1 %v3258_v49  ;;  %v3267_v56 = vadd.f32 %v2574_v50, %v2356_v24 }
 0x26b   : > { %v1073_v53 = vpop.f32.mrf.mxu0 }
 0x26c   : > { %v3263_v28 = vadd.f32 %v2356_v24, %v1073_v53 }
 0x26e   : > { %v2577_v6 = vpop.f32.mrf.mxu0  ;;  %1121 = vadd.xlane.f32.xlu1 %v3261_v7  ;;  %1119 = vadd.xlane.f32.xlu0 %v3263_v28 }
 0x26f   : > { %v3273_v16 = vadd.f32 %v2577_v6, %v2356_v24 }
 0x270   : > { %v1086_v29 = vpop.f32.mrf.mxu0 }
 0x271   : > { %v3269_v61 = vadd.f32 %v2356_v24, %v1086_v29 }
 0x272   : > { %v2578_v62 = vpop.f32.mrf.mxu0  ;;  %1123 = vadd.xlane.f32.xlu0 %v3267_v56 }
 0x273   : > { %1125 = vadd.xlane.f32.xlu1 %v3269_v61  ;;  %v3279_v15 = vadd.f32 %v2578_v62, %v2356_v24 }
 0x274   : > { %v1089_v63 = vpop.f32.mrf.mxu0 }
 0x275   : > { %v3275_v0 = vadd.f32 %v2356_v24, %v1089_v63 }
 0x277   : > { %1129 = vadd.xlane.f32.xlu1 %v3273_v16  ;;  %1127 = vadd.xlane.f32.xlu0 %v3275_v0 }
 0x27b   : > { %1131 = vadd.xlane.f32.xlu0 %v3279_v15 }
 0x2d3   : > { %v1102_v8 = vpop.xlane.xlu0 %1101 }
 0x2d4   : > { %v1134_v43 = vmul.f32 0.0078125, %v1102_v8 }
 0x2d6   : > { %v3282_v12 = vsub.f32 %v1039_v60, %v1134_v43 }
 0x2d7   : > { %v1104_v13 = vpop.xlane.xlu1 %1103  ;;  %v1106_v42 = vpop.xlane.xlu0 %1105 }
 0x2d8   : > { %v1135_v4 = vmul.f32 0.0078125, %v1104_v13  ;;  %v1136_v3 = vmul.f32 0.0078125, %v1106_v42  ;;  %v1166_v25 = vmul.f32 %v3282_v12, %v3282_v12 }
 0x2da   : > { %v3286_v9 = vsub.f32 %v1042_v19, %v1135_v4  ;;  %v3288_v14 = vsub.f32 %v1047_v17, %v1136_v3  ;;  %1182 = vadd.xlane.f32.xlu1 %v1166_v25 }
 0x2db   : > { %v1108_v24 = vpop.xlane.xlu0 %1107 }
 0x2dc   : > { %v1137_v23 = vmul.f32 0.0078125, %v1108_v24  ;;  %v1167_v33 = vmul.f32 %v3286_v9, %v3286_v9  ;;  %v1168_v60 = vmul.f32 %v3288_v14, %v3288_v14 }
 0x2de   : > { %v3294_v30 = vsub.f32 %v1050_v22, %v1137_v23  ;;  %1184 = vadd.xlane.f32.xlu0 %v1167_v33  ;;  %1186 = vadd.xlane.f32.xlu1 %v1168_v60 }
 0x2e0   : > { %v1169_v37 = vmul.f32 %v3294_v30, %v3294_v30 }
 0x2e2   : > { %1188 = vadd.xlane.f32.xlu0 %v1169_v37 }
 0x2e3   : > { %v1110_v19 = vpop.xlane.xlu1 %1109 }
 0x2e4   : > { %v1138_v17 = vmul.f32 0.0078125, %v1110_v19 }
 0x2e6   : > { %v3298_v44 = vsub.f32 %v1055_v55, %v1138_v17 }
 0x2e7   : > { %v1114_v48 = vpop.xlane.xlu1 %1113  ;;  %v1112_v50 = vpop.xlane.xlu0 %1111 }
 0x2e8   : > { %v1140_v53 = vmul.f32 0.0078125, %v1114_v48  ;;  %v1139_v6 = vmul.f32 0.0078125, %v1112_v50  ;;  %v1170_v29 = vmul.f32 %v3298_v44, %v3298_v44 }
 0x2ea   : > { %v3302_v62 = vsub.f32 %v1063_v54, %v1140_v53  ;;  %v3304_v22 = vsub.f32 %v1058_v31, %v1139_v6  ;;  %1190 = vadd.xlane.f32.xlu1 %v1170_v29 }
 0x2eb   : > { %v1116_v63 = vpop.xlane.xlu0 %1115 }
 0x2ec   : > { %v1141_v8 = vmul.f32 0.0078125, %v1116_v63  ;;  %v1172_v43 = vmul.f32 %v3302_v62, %v3302_v62  ;;  %v1171_v55 = vmul.f32 %v3304_v22, %v3304_v22 }
 0x2ee   : > { %v3310_v13 = vsub.f32 %v1066_v39, %v1141_v8  ;;  %1194 = vadd.xlane.f32.xlu1 %v1172_v43  ;;  %1192 = vadd.xlane.f32.xlu0 %v1171_v55 }
 0x2f0   : > { %v1173_v42 = vmul.f32 %v3310_v13, %v3310_v13 }
 0x2f2   : > { %1196 = vadd.xlane.f32.xlu0 %v1173_v42 }
 0x2f3   : > { %v1118_v54 = vpop.xlane.xlu1 %1117 }
 0x2f4   : > { %v1142_v31 = vmul.f32 0.0078125, %v1118_v54 }
 0x2f6   : > { %v3315_v4 = vsub.f32 %v3258_v49, %v1142_v31 }
 0x2f7   : > { %v1122_v3 = vpop.xlane.xlu1 %1121  ;;  %v1120_v25 = vpop.xlane.xlu0 %1119 }
 0x2f8   : > { %v1144_v24 = vmul.f32 0.0078125, %v1122_v3  ;;  %v1143_v23 = vmul.f32 0.0078125, %v1120_v25  ;;  %v1174_v33 = vmul.f32 %v3315_v4, %v3315_v4 }
 0x2fa   : > { %v3320_v39 = vsub.f32 %v3261_v7, %v1144_v24  ;;  %v3323_v60 = vsub.f32 %v3263_v28, %v1143_v23  ;;  %1198 = vadd.xlane.f32.xlu1 %v1174_v33 }
 0x2fb   : > { %v1124_v37 = vpop.xlane.xlu0 %1123 }
 0x2fc   : > { %v1145_v19 = vmul.f32 0.0078125, %v1124_v37  ;;  %v1126_v17 = vpop.xlane.xlu1 %1125  ;;  %v1176_v49 = vmul.f32 %v3320_v39, %v3320_v39  ;;  %v1175_v48 = vmul.f32 %v3323_v60, %v3323_v60 }
 0x2fd   : > { %v1146_v50 = vmul.f32 0.0078125, %v1126_v17 }
 0x2fe   : > { %v3330_v53 = vsub.f32 %v3267_v56, %v1145_v19  ;;  %1202 = vadd.xlane.f32.xlu1 %v1176_v49  ;;  %1200 = vadd.xlane.f32.xlu0 %v1175_v48 }
 0x2ff   : > { %v3333_v7 = vsub.f32 %v3269_v61, %v1146_v50 }
 0x300   : > { %v1130_v28 = vpop.xlane.xlu1 %1129  ;;  %v1128_v6 = vpop.xlane.xlu0 %1127  ;;  %v1177_v29 = vmul.f32 %v3330_v53, %v3330_v53 }
 0x301   : > { %v1148_v63 = vmul.f32 0.0078125, %v1130_v28  ;;  %v1147_v8 = vmul.f32 0.0078125, %v1128_v6  ;;  %v1178_v43 = vmul.f32 %v3333_v7, %v3333_v7 }
 0x302   : > { %1204 = vadd.xlane.f32.xlu0 %v1177_v29 }
 0x303   : > { %v3340_v55 = vsub.f32 %v3273_v16, %v1148_v63  ;;  %v3343_v56 = vsub.f32 %v3275_v0, %v1147_v8  ;;  %1206 = vadd.xlane.f32.xlu1 %v1178_v43  ;;  %v3357_v63 = vld [vmem:[%s3751_s5] ss:$0 sm:$0xff] }
 0x304   : > { %v1132_v61 = vpop.xlane.xlu0 %1131 }
 0x305   : > { %v1149_v42 = vmul.f32 0.0078125, %v1132_v61  ;;  %v1180_v54 = vmul.f32 %v3340_v55, %v3340_v55  ;;  %v1179_v31 = vmul.f32 %v3343_v56, %v3343_v56 }
 0x307   : > { %v3350_v3 = vsub.f32 %v3279_v15, %v1149_v42  ;;  %1210 = vadd.xlane.f32.xlu1 %v1180_v54  ;;  %1208 = vadd.xlane.f32.xlu0 %v1179_v31 }
 0x309   : > { %v1181_v16 = vmul.f32 %v3350_v3, %v3350_v3 }
 0x30b   : > { %1212 = vadd.xlane.f32.xlu0 %v1181_v16 }
 0x363   : > { %v1183_v0 = vpop.xlane.xlu1 %1182 }
 0x364   : > { %v1214_v25 = vmul.f32 0.0078125, %v1183_v0  ;;  %v3364_v0 = vld [vmem:[%s3752_s6] ss:$0 sm:$0xff] }
 0x366   : > { %v1230_v24 = vadd.f32 1e-05, %v1214_v25 }
 0x367   : > { %v1187_v23 = vpop.xlane.xlu1 %1186  ;;  %v1185_v33 = vpop.xlane.xlu0 %1184 }
 0x368   : > { %2740 = vrsqrt.f32 %v1230_v24  ;;  %v1216_v37 = vmul.f32 0.0078125, %v1187_v23  ;;  %v1215_v19 = vmul.f32 0.0078125, %v1185_v33 }
 0x36a   : > { %v1232_v17 = vadd.f32 1e-05, %v1216_v37  ;;  %v1231_v49 = vadd.f32 1e-05, %v1215_v19 }
 0x36b   : > { %v1189_v48 = vpop.xlane.xlu0 %1188 }
 0x36c   : > { %2742 = vrsqrt.f32 %v1232_v17  ;;  %v1217_v15 = vmul.f32 0.0078125, %v1189_v48 }
 0x36d   : > { %2744 = vrsqrt.f32 %v1231_v49 }
 0x36e   : > { %v1233_v50 = vadd.f32 1e-05, %v1217_v15 }
 0x370   : > { %2746 = vrsqrt.f32 %v1233_v50 }
 0x373   : > { %v1191_v28 = vpop.xlane.xlu1 %1190 }
 0x374   : > { %v1218_v6 = vmul.f32 0.0078125, %v1191_v28 }
 0x375   : > { %v2741_v29 = vpop.eup %2740 }
 0x376   : > { %v1262_v8 = vmul.f32 %v2741_v29, %v3282_v12  ;;  %v1234_v43 = vadd.f32 1e-05, %v1218_v6 }
 0x377   : > { %v1195_v61 = vpop.xlane.xlu1 %1194  ;;  %v1193_v42 = vpop.xlane.xlu0 %1192 }
 0x378   : > { %2748 = vrsqrt.f32 %v1234_v43  ;;  %v1220_v54 = vmul.f32 0.0078125, %v1195_v61  ;;  %v1219_v31 = vmul.f32 0.0078125, %v1193_v42  ;;  %v1285_v16 = vmul.f32 %v3357_v63, %v1262_v8 }
 0x379   : > { %v2743_v25 = vpop.eup %2742 }
 0x37a   : > { %v2745_v24 = vpop.eup %2744  ;;  %v1264_v23 = vmul.f32 %v2743_v25, %v3288_v14  ;;  %v1236_v33 = vadd.f32 1e-05, %v1220_v54  ;;  %v1235_v37 = vadd.f32 1e-05, %v1219_v31  ;;  %v1308_v17 = vadd.f32 %v3364_v0, %v1285_v16 }
 0x37b   : > { %v1263_v12 = vmul.f32 %v2745_v24, %v3286_v9  ;;  %v1197_v19 = vpop.xlane.xlu0 %1196 }
 0x37c   : > { %2750 = vrsqrt.f32 %v1236_v33  ;;  %v1221_v49 = vmul.f32 0.0078125, %v1197_v19  ;;  %v1287_v48 = vmul.f32 %v3357_v63, %v1264_v23  ;;  %v1324_v8 = vmax.f32 %v1308_v17, 0.0 }
 0x37d   : > { %v2747_v15 = vpop.eup %2746  ;;  %2752 = vrsqrt.f32 %v1235_v37  ;;  %v1286_v50 = vmul.f32 %v3357_v63, %v1263_v12 }
 0x37e   : > { %v1265_v28 = vmul.f32 %v2747_v15, %v3294_v30  ;;  %v1237_v6 = vadd.f32 1e-05, %v1221_v49  ;;  %v1310_v14 = vadd.f32 %v3364_v0, %v1287_v48  ;;  %v3377_v31 = vmul.f32 %v1324_v8, %v3059_v21 }
 0x37f   : > { %v1309_v29 = vadd.f32 %v3364_v0, %v1286_v50 }
 0x380   : > { %2754 = vrsqrt.f32 %v1237_v6  ;;  %v1288_v9 = vmul.f32 %v3357_v63, %v1265_v28  ;;  %v1326_v42 = vmax.f32 %v1310_v14, 0.0 }
 0x381   : > { %v1325_v43 = vmax.f32 %v1309_v29, 0.0 }
 0x382   : > { %v1311_v61 = vadd.f32 %v3364_v0, %v1288_v9  ;;  %v3386_v12 = vmul.f32 %v1326_v42, %v3057_v20 }
 0x383   : > { %v1199_v54 = vpop.xlane.xlu1 %1198  ;;  %v3380_v16 = vmul.f32 %v1325_v43, %v3063_v27 }
 0x384   : > { %v1222_v30 = vmul.f32 0.0078125, %v1199_v54  ;;  %v1327_v25 = vmax.f32 %v1311_v61, 0.0 }
 0x385   : > { %v2749_v24 = vpop.eup %2748  ;;  %v1356_v23 = vpack.c.bf16 %v3380_v16, %v3377_v31 }
 0x386   : > { %v1266_v33 = vmul.f32 %v2749_v24, %v3298_v44  ;;  %v1238_v37 = vadd.f32 1e-05, %v1222_v30  ;;  %v3389_v19 = vmul.f32 %v1327_v25, %v3061_v26 }
 0x387   : > { %2580 = vmatpush3.bf16.msra.mxu1 %v1356_v23  ;;  %v1203_v17 = vpop.xlane.xlu1 %1202  ;;  %v1201_v49 = vpop.xlane.xlu0 %1200 }
 0x388   : > { %2756 = vrsqrt.f32 %v1238_v37  ;;  %v1224_v48 = vmul.f32 0.0078125, %v1203_v17  ;;  %v1223_v15 = vmul.f32 0.0078125, %v1201_v49  ;;  %2585 = vmatprep.subr.bf16.mxu1 %v2900_v5  ;;  %v1357_v50 = vpack.c.bf16 %v3389_v19, %v3386_v12 }
 0x389   : > { %v2751_v28 = vpop.eup %2750  ;;  %v1289_v44 = vmul.f32 %v3357_v63, %v1266_v33 }
 0x38a   : > { %v2753_v6 = vpop.eup %2752  ;;  %v1268_v14 = vmul.f32 %v2751_v28, %v3302_v62  ;;  %v1240_v29 = vadd.f32 1e-05, %v1224_v48  ;;  %v1239_v8 = vadd.f32 1e-05, %v1223_v15  ;;  %2582 = vmatmul.mubr.msk.bf16.vlgmr.msra.gmra.mxu1 %vm521_vm1, %v3085_v36 }
 0x38b   : > { %v1267_v9 = vmul.f32 %v2753_v6, %v3304_v22  ;;  %2586 = vmatpush3.bf16.msra.mxu1 %v1357_v50  ;;  %v1205_v43 = vpop.xlane.xlu0 %1204  ;;  %2587 = vmatprep.mubr.msk.bf16.mxu1 %vm2901_vm0, %v2900_v5  ;;  %v1312_v61 = vadd.f32 %v3364_v0, %v1289_v44 }
 0x38c   : > { %2758 = vrsqrt.f32 %v1240_v29  ;;  %v1225_v42 = vmul.f32 0.0078125, %v1205_v43  ;;  %v1207_v54 = vpop.xlane.xlu1 %1206  ;;  %2591 = vmatprep.subr.bf16.mxu1 %v2900_v5  ;;  %v1291_v62 = vmul.f32 %v3357_v63, %v1268_v14 }
 0x38d   : > { %v2755_v30 = vpop.eup %2754  ;;  %2760 = vrsqrt.f32 %v1239_v8  ;;  %v1226_v25 = vmul.f32 0.0078125, %v1207_v54  ;;  %v1290_v36 = vmul.f32 %v3357_v63, %v1267_v9  ;;  %v1328_v17 = vmax.f32 %v1312_v61, 0.0 }
 0x38e   : > { %v1269_v22 = vmul.f32 %v2755_v30, %v3310_v13  ;;  %v1241_v24 = vadd.f32 1e-05, %v1225_v42  ;;  %v1314_v23 = vadd.f32 %v3364_v0, %v1291_v62 }
 0x38f   : > { %v1242_v33 = vadd.f32 1e-05, %v1226_v25  ;;  %v1313_v37 = vadd.f32 %v3364_v0, %v1290_v36  ;;  %v3413_v8 = vmul.f32 %v1328_v17, %v3082_v35 }
 0x390   : > { %2762 = vrsqrt.f32 %v1241_v24  ;;  %v1211_v49 = vpop.xlane.xlu1 %1210  ;;  %v1209_v48 = vpop.xlane.xlu0 %1208  ;;  %v1292_v15 = vmul.f32 %v3357_v63, %v1269_v22  ;;  %v1330_v6 = vmax.f32 %v1314_v23, 0.0 }
 0x391   : > { %2764 = vrsqrt.f32 %v1242_v33  ;;  %v1228_v50 = vmul.f32 0.0078125, %v1211_v49  ;;  %v1227_v28 = vmul.f32 0.0078125, %v1209_v48  ;;  %v1329_v44 = vmax.f32 %v1313_v37, 0.0 }
 0x392   : > { %2588 = vmatmul.mubr.msk.bf16.vlgmr.msra.gmra.mxu1 %vm521_vm1, %v3111_v47  ;;  %v1315_v13 = vadd.f32 %v3364_v0, %v1292_v15  ;;  %v3424_v30 = vmul.f32 %v1330_v6, %v3092_v41 }
 0x393   : > { %v1244_v14 = vadd.f32 1e-05, %v1228_v50  ;;  %v1243_v29 = vadd.f32 1e-05, %v1227_v28  ;;  %v3416_v9 = vmul.f32 %v1329_v44, %v3080_v34  ;;  %2593 = vmatprep.mubr.msk.bf16.mxu1 %vm2901_vm0, %v2900_v5 }
 0x394   : > { %v1213_v43 = vpop.xlane.xlu0 %1212  ;;  %v1331_v61 = vmax.f32 %v1315_v13, 0.0 }
 0x395   : > { %v2757_v42 = vpop.eup %2756  ;;  %2766 = vrsqrt.f32 %v1244_v14  ;;  %v1229_v54 = vmul.f32 0.0078125, %v1213_v43  ;;  %v1358_v47 = vpack.c.bf16 %v3416_v9, %v3413_v8 }
 0x396   : > { %v1270_v62 = vmul.f32 %v2757_v42, %v3315_v4  ;;  %2768 = vrsqrt.f32 %v1243_v29  ;;  %v3427_v25 = vmul.f32 %v1331_v61, %v3090_v40 }
 0x397   : > { %v1245_v36 = vadd.f32 1e-05, %v1229_v54  ;;  %2592 = vmatpush3.bf16.msra.mxu1 %v1358_v47 }
 0x398   : > { %2597 = vmatprep.subr.bf16.mxu1 %v2900_v5  ;;  %v1359_v22 = vpack.c.bf16 %v3427_v25, %v3424_v30  ;;  %v1293_v24 = vmul.f32 %v3357_v63, %v1270_v62 }
 0x399   : > { %v2759_v23 = vpop.eup %2758  ;;  %2770 = vrsqrt.f32 %v1245_v36 }
 0x39a   : > { %v2761_v33 = vpop.eup %2760  ;;  %v1272_v4 = vmul.f32 %v2759_v23, %v3320_v39  ;;  %2594 = vmatmul.mubr.msk.bf16.vlgmr.msra.gmra.mxu1 %vm521_vm1, %v3137_v59  ;;  %v1316_v17 = vadd.f32 %v3364_v0, %v1293_v24 }
 0x39b   : > { %v1271_v37 = vmul.f32 %v2761_v33, %v3323_v60  ;;  %2598 = vmatpush3.bf16.msra.mxu1 %v1359_v22  ;;  %2599 = vmatprep.mubr.msk.bf16.mxu1 %vm2901_vm0, %v2900_v5 }
 0x39c   : > { %2603 = vmatprep.subr.bf16.mxu1 %v2900_v5  ;;  %v1295_v49 = vmul.f32 %v3357_v63, %v1272_v4  ;;  %v1332_v44 = vmax.f32 %v1316_v17, 0.0 }
 0x39d   : > { %v2763_v48 = vpop.eup %2762  ;;  %v1294_v15 = vmul.f32 %v3357_v63, %v1271_v37 }
 0x39e   : > { %v2765_v50 = vpop.eup %2764  ;;  %v1273_v39 = vmul.f32 %v2763_v48, %v3330_v53  ;;  %v1318_v59 = vadd.f32 %v3364_v0, %v1295_v49  ;;  %v3453_v42 = vmul.f32 %v1332_v44, %v3108_v46 }
 0x39f   : > { %v1274_v60 = vmul.f32 %v2765_v50, %v3333_v7  ;;  %v1317_v28 = vadd.f32 %v3364_v0, %v1294_v15 }
 0x3a0   : > { %v1296_v13 = vmul.f32 %v3357_v63, %v1273_v39  ;;  %v1334_v43 = vmax.f32 %v1318_v59, 0.0 }
 0x3a1   : > { %v1333_v6 = vmax.f32 %v1317_v28, 0.0  ;;  %v1297_v54 = vmul.f32 %v3357_v63, %v1274_v60  ;;  %v2732_v28 = vld [vmem:[#allocation2 + $0x78] sm:$0xff]  }
 0x3a2   : > { %v2767_v14 = vpop.eup %2766  ;;  %2600 = vmatmul.mubr.msk.bf16.vlgmr.msra.gmra.mxu1 %vm521_vm1, %v3166_v10  ;;  %v1319_v29 = vadd.f32 %v3364_v0, %v1296_v13  ;;  %v3466_v22 = vmul.f32 %v1334_v43, %v3117_v52  ;;  %v2733_v13 = vld [vmem:[#allocation2 + $0x70] sm:$0xff]  }
 0x3a3   : > { %v2769_v61 = vpop.eup %2768  ;;  %v1276_v53 = vmul.f32 %v2767_v14, %v3340_v55  ;;  %v3456_v7 = vmul.f32 %v1333_v6, %v3106_v45  ;;  %2605 = vmatprep.mubr.msk.bf16.mxu1 %vm2901_vm0, %v2900_v5  ;;  %v2734_v6 = vld [vmem:[#allocation2 + $0x68] sm:$0xff]   ;;  %v2735_v14 = vld [vmem:[#allocation2 + $0x60] sm:$0xff]  }
 0x3a4   : > { %v1275_v47 = vmul.f32 %v2769_v61, %v3343_v56  ;;  %v1335_v10 = vmax.f32 %v1319_v29, 0.0  ;;  %v1320_v56 = vadd.f32 %v3364_v0, %v1297_v54  ;;  %v2739_v29 = vld [vmem:[#allocation2 + $0x40] sm:$0xff]  }
 0x3a5   : > { %v1360_v62 = vpack.c.bf16 %v3456_v7, %v3453_v42  ;;  %v1299_v36 = vmul.f32 %v3357_v63, %v1276_v53 }
 0x3a6   : > { %v2771_v55 = vpop.eup %2770  ;;  %v3469_v24 = vmul.f32 %v1335_v10, %v3115_v51  ;;  %v1298_v23 = vmul.f32 %v3357_v63, %v1275_v47 }
 0x3a7   : > { %v1277_v33 = vmul.f32 %v2771_v55, %v3350_v3  ;;  %2604 = vmatpush3.bf16.msra.mxu1 %v1360_v62  ;;  %v1322_v4 = vadd.f32 %v3364_v0, %v1299_v36  ;;  %v1336_v3 = vmax.f32 %v1320_v56, 0.0 }
 0x3a8   : > { %2609 = vmatprep.subr.bf16.mxu1 %v2900_v5  ;;  %v1361_v37 = vpack.c.bf16 %v3469_v24, %v3466_v22  ;;  %v1321_v17 = vadd.f32 %v3364_v0, %v1298_v23 }
 0x3a9   : > { %v1300_v49 = vmul.f32 %v3357_v63, %v1277_v33  ;;  %v1338_v50 = vmax.f32 %v1322_v4, 0.0  ;;  %v3490_v63 = vmul.f32 %v1336_v3, %v3134_v58 }
 0x3aa   : > { %2606 = vmatmul.mubr.msk.bf16.vlgmr.msra.gmra.mxu1 %vm521_vm1, %v3191_v18  ;;  %v1337_v48 = vmax.f32 %v1321_v17, 0.0 }
 0x3ab   : > { %2610 = vmatpush3.bf16.msra.mxu1 %v1361_v37  ;;  %2611 = vmatprep.mubr.msk.bf16.mxu1 %vm2901_vm0, %v2900_v5  ;;  %v1323_v15 = vadd.f32 %v3364_v0, %v1300_v49  ;;  %v3493_v18 = vmul.f32 %v1338_v50, %v3143_v2 }
 0x3ac   : > { %2615 = vmatprep.subr.bf16.mxu1 %v2900_v5  ;;  %v3487_v39 = vmul.f32 %v1337_v48, %v3132_v57 }
 0x3ad   : > { %v1339_v59 = vmax.f32 %v1323_v15, 0.0 }
 0x3ae   : > { %v1362_v0 = vpack.c.bf16 %v3487_v39, %v3490_v63 }
 0x3af   : > { %v3496_v60 = vmul.f32 %v1339_v59, %v3141_v1 }
 0x3b1   : > { %v1363_v44 = vpack.c.bf16 %v3496_v60, %v3493_v18 }
 0x3b2   : > { %2612 = vmatmul.mubr.msk.bf16.vlgmr.msra.gmra.mxu1 %vm521_vm1, %v3207_v32  ;;  %v2736_v32 = vld [vmem:[#allocation2 + $0x58] sm:$0xff]  }
 0x3b3   : > { %2616 = vmatpush3.bf16.msra.mxu1 %v1362_v0  ;;  %2622 = vmatpush3.bf16.msra.mxu0 %v1363_v44 }
 0x3b4   : > { %2617 = vmatprep.mubr.msk.bf16.mxu1 %vm2901_vm0, %v2900_v5  ;;  %2627 = vmatprep.subr.bf16.mxu1 %v2732_v28  ;;  %v2737_v5 = vld [vmem:[#allocation2 + $0x50] sm:$0xff]  }
 0x3b6   : > { %2624 = vmatmul.mubr.msk.bf16.vlgmr.msra.gmra.mxu0 %vm521_vm1, %v3169_v11  ;;  %v2738_v11 = vld [vmem:[#allocation2 + $0x48] sm:$0xff]  }
 0x3ba   : > { %2618 = vmatmul.mubr.msk.bf16.vlgmr.msra.gmra.mxu1 %vm521_vm1, %v3216_v38 }
 0x3bb   : > { %2628 = vmatpush3.bf16.msra.mxu1 %v2732_v28 }
 0x3bc   : > { %2629 = vmatprep.subr.bf16.mxu1 %v2733_v13 }
 0x3bf   : > { %2630 = vmatpush3.bf16.msra.mxu1 %v2733_v13 }
 0x3c0   : > { %2631 = vmatprep.subr.bf16.mxu1 %v2734_v6 }
 0x3c3   : > { %2632 = vmatpush3.bf16.msra.mxu1 %v2734_v6 }
 0x3c4   : > { %2633 = vmatprep.subr.bf16.mxu1 %v2735_v14 }
 0x3c7   : > { %2634 = vmatpush3.bf16.msra.mxu1 %v2735_v14 }
 0x3c8   : > { %2635 = vmatprep.subr.bf16.mxu1 %v2736_v32 }
 0x3cb   : > { %2636 = vmatpush3.bf16.msra.mxu1 %v2736_v32 }
 0x3cc   : > { %2637 = vmatprep.subr.bf16.mxu1 %v2737_v5 }
 0x3cf   : > { %2638 = vmatpush3.bf16.msra.mxu1 %v2737_v5 }
 0x3d0   : > { %2639 = vmatprep.subr.bf16.mxu1 %v2738_v11 }
 0x3d3   : > { %2640 = vmatpush3.bf16.msra.mxu1 %v2738_v11 }
 0x3d4   : > { %2641 = vmatprep.subr.bf16.mxu1 %v2739_v29 }
 0x3d7   : > { %2642 = vmatpush3.bf16.msra.mxu1 %v2739_v29 }
 0x44a   : > { %v1398_v38 = vpop.f32.mrf.mxu1 }
 0x44b   : > { %v1399_v61 = vadd.f32 %v1398_v38, %v3377_v31 }
 0x44c   : > { %v2583_v43 = vpop.f32.mrf.mxu1 }
 0x44d   : > { %v1692_v10 = vmul.f32 %v1399_v61, %v3059_v21 }
 0x44e   : > { %v1401_v53 = vpop.f32.mrf.mxu1 }
 0x44f   : > { %v1402_v54 = vadd.f32 %v1401_v53, %v3380_v16 }
 0x450   : > { %v2584_v47 = vpop.f32.mrf.mxu1 }
 0x451   : > { %v1693_v62 = vmul.f32 %v1402_v54, %v3063_v27 }
 0x452   : > { %v1439_v36 = vpop.f32.mrf.mxu1 }
 0x453   : > { %v1708_v55 = vpack.c.bf16 %v1693_v62, %v1692_v10  ;;  %v1440_v33 = vadd.f32 %v1439_v36, %v3386_v12 }
 0x454   : > { %v2589_v23 = vpop.f32.mrf.mxu1 }
 0x455   : > { %2643 = vmatprep.mubr.bf16.mxu1 %v1708_v55  ;;  %v1694_v31 = vmul.f32 %v1440_v33, %v3057_v20 }
 0x456   : > { %v1442_v56 = vpop.f32.mrf.mxu1 }
 0x457   : > { %v1443_v4 = vadd.f32 %v1442_v56, %v3389_v19 }
 0x458   : > { %v2590_v37 = vpop.f32.mrf.mxu1 }
 0x459   : > { %v1695_v17 = vmul.f32 %v1443_v4, %v3061_v26 }
 0x45a   : > { %v1480_v16 = vpop.f32.mrf.mxu1 }
 0x45b   : > { %v1709_v49 = vpack.c.bf16 %v1695_v17, %v1694_v31  ;;  %v1481_v21 = vadd.f32 %v1480_v16, %v3413_v8 }
 0x45c   : > { %v2595_v48 = vpop.f32.mrf.mxu1 }
 0x45d   : > { %2644 = vmatmul.mubr.bf16.vlgmr.msra.gmra.mxu1 %v1709_v49  ;;  %v1696_v12 = vmul.f32 %v1481_v21, %v3082_v35 }
 0x45e   : > { %v1483_v27 = vpop.f32.mrf.mxu1 }
 0x45f   : > { %v1484_v3 = vadd.f32 %v1483_v27, %v3416_v9 }
 0x460   : > { %v2596_v15 = vpop.f32.mrf.mxu1 }
 0x461   : > { %v1697_v50 = vmul.f32 %v1484_v3, %v3080_v34 }
 0x462   : > { %v1521_v19 = vpop.f32.mrf.mxu1 }
 0x463   : > { %v1710_v59 = vpack.c.bf16 %v1697_v50, %v1696_v12  ;;  %v1522_v20 = vadd.f32 %v1521_v19, %v3424_v30 }
 0x464   : > { %v2601_v28 = vpop.f32.mrf.mxu1 }
 0x465   : > { %2647 = vmatprep.mubr.bf16.mxu1 %v1710_v59  ;;  %v1698_v8 = vmul.f32 %v1522_v20, %v3092_v41 }
 0x466   : > { %v1524_v26 = vpop.f32.mrf.mxu1 }
 0x467   : > { %v1525_v0 = vadd.f32 %v1524_v26, %v3427_v25 }
 0x468   : > { %v2602_v44 = vpop.f32.mrf.mxu1 }
 0x469   : > { %v1699_v13 = vmul.f32 %v1525_v0, %v3090_v40 }
 0x46a   : > { %v1562_v9 = vpop.f32.mrf.mxu1 }
 0x46b   : > { %v1711_v6 = vpack.c.bf16 %v1699_v13, %v1698_v8  ;;  %v1563_v35 = vadd.f32 %v1562_v9, %v3453_v42 }
 0x46c   : > { %v2607_v14 = vpop.f32.mrf.mxu1 }
 0x46d   : > { %2648 = vmatmul.mubr.bf16.gmra.mxu1 %v1711_v6  ;;  %v1700_v30 = vmul.f32 %v1563_v35, %v3108_v46 }
 0x46e   : > { %v1565_v34 = vpop.f32.mrf.mxu1 }
 0x46f   : > { %v1566_v32 = vadd.f32 %v1565_v34, %v3456_v7 }
 0x470   : > { %v2608_v5 = vpop.f32.mrf.mxu1 }
 0x471   : > { %v1701_v11 = vmul.f32 %v1566_v32, %v3106_v45 }
 0x472   : > { %v1603_v25 = vpop.f32.mrf.mxu1 }
 0x473   : > { %v1712_v29 = vpack.c.bf16 %v1701_v11, %v1700_v30  ;;  %v1604_v41 = vadd.f32 %v1603_v25, %v3466_v22 }
 0x474   : > { %v2613_v38 = vpop.f32.mrf.mxu1 }
 0x475   : > { %2651 = vmatprep.mubr.bf16.mxu1 %v1712_v29  ;;  %v1702_v54 = vmul.f32 %v1604_v41, %v3117_v52 }
 0x476   : > { %v1606_v40 = vpop.f32.mrf.mxu1  ;;  %v1685_v43 = vpop.f32.mrf.mxu0 }
 0x477   : > { %v1607_v61 = vadd.f32 %v1606_v40, %v3469_v24  ;;  %v1686_v55 = vadd.f32 %v1685_v43, %v3493_v18 }
 0x478   : > { %v2614_v42 = vpop.f32.mrf.mxu1  ;;  %v2625_v53 = vpop.f32.mrf.mxu0 }
 0x479   : > { %v1703_v7 = vmul.f32 %v1607_v61, %v3115_v51  ;;  %v1706_v4 = vmul.f32 %v1686_v55, %v3143_v2 }
 0x47a   : > { %v1644_v47 = vpop.f32.mrf.mxu1  ;;  %v1688_v46 = vpop.f32.mrf.mxu0 }
 0x47b   : > { %v1713_v10 = vpack.c.bf16 %v1703_v7, %v1702_v54  ;;  %v1689_v45 = vadd.f32 %v1688_v46, %v3496_v60  ;;  %v1645_v22 = vadd.f32 %v1644_v47, %v3490_v63  ;;  %v2376_v63 = vld [vmem:[%s3750_s4 + $0x1] ss:$0 sm:$0xff] }
 0x47c   : > { %v2619_v62 = vpop.f32.mrf.mxu1  ;;  %v2626_v36 = vpop.f32.mrf.mxu0 }
 0x47d   : > { %2652 = vmatmul.mubr.bf16.gmra.mxu1 %v1713_v10  ;;  %v1707_v33 = vmul.f32 %v1689_v45, %v3141_v1  ;;  %v1704_v51 = vmul.f32 %v1645_v22, %v3134_v58 }
 0x47e   : > { %v1647_v23 = vpop.f32.mrf.mxu1 }
 0x47f   : > { %v1648_v24 = vadd.f32 %v1647_v23, %v3487_v39  ;;  %v1715_v37 = vpack.c.bf16 %v1707_v33, %v1706_v4 }
 0x480   : > { %v2620_v52 = vpop.f32.mrf.mxu1 }
 0x481   : > { %v1705_v56 = vmul.f32 %v1648_v24, %v3132_v57 }
 0x483   : > { %v1714_v60 = vpack.c.bf16 %v1705_v56, %v1704_v51 }
 0x485   : > { %2655 = vmatprep.mubr.bf16.mxu1 %v1714_v60 }
 0x486   : > { %2656 = vmatmul.mubr.bf16.gmra.mxu1 %v1715_v37 }
 0x51d   : > { %v2645_v18 = vpop.f32.mrf.mxu1 }
 0x51e   : > { %v1832_v31 = vadd.f32 %v2645_v18, %v2376_v63 }
 0x51f   : > { %v1823_v39 = vpop.f32.mrf.mxu1 }
 0x520   : > { %1890 = vadd.xlane.f32.xlu1 %v1832_v31  ;;  %v1824_v17 = vadd.f32 %v2376_v63, %v1823_v39 }
 0x521   : > { %v2646_v1 = vpop.f32.mrf.mxu1 }
 0x522   : > { %v1835_v16 = vadd.f32 %v2646_v1, %v2376_v63 }
 0x523   : > { %v1826_v58 = vpop.f32.mrf.mxu1 }
 0x524   : > { %1892 = vadd.xlane.f32.xlu0 %v1835_v16  ;;  %1886 = vadd.xlane.f32.xlu1 %v1824_v17  ;;  %v1827_v57 = vadd.f32 %v2376_v63, %v1826_v58 }
 0x528   : > { %1888 = vadd.xlane.f32.xlu0 %v1827_v57 }
 0x52d   : > { %v2649_v2 = vpop.f32.mrf.mxu1 }
 0x52e   : > { %v1848_v49 = vadd.f32 %v2649_v2, %v2376_v63 }
 0x52f   : > { %v1839_v48 = vpop.f32.mrf.mxu1 }
 0x530   : > { %1898 = vadd.xlane.f32.xlu1 %v1848_v49  ;;  %v1840_v27 = vadd.f32 %v2376_v63, %v1839_v48 }
 0x531   : > { %v2650_v21 = vpop.f32.mrf.mxu1 }
 0x532   : > { %v1851_v3 = vadd.f32 %v2650_v21, %v2376_v63 }
 0x533   : > { %v1842_v15 = vpop.f32.mrf.mxu1 }
 0x534   : > { %1900 = vadd.xlane.f32.xlu0 %v1851_v3  ;;  %1894 = vadd.xlane.f32.xlu1 %v1840_v27  ;;  %v1843_v12 = vadd.f32 %v2376_v63, %v1842_v15 }
 0x538   : > { %1896 = vadd.xlane.f32.xlu0 %v1843_v12 }
 0x53d   : > { %v2653_v50 = vpop.f32.mrf.mxu1 }
 0x53e   : > { %v3545_v19 = vadd.f32 %v2653_v50, %v2376_v63 }
 0x53f   : > { %v1855_v59 = vpop.f32.mrf.mxu1 }
 0x540   : > { %1906 = vadd.xlane.f32.xlu1 %v3545_v19  ;;  %v3548_v20 = vadd.f32 %v2376_v63, %v1855_v59 }
 0x541   : > { %v2654_v28 = vpop.f32.mrf.mxu1 }
 0x542   : > { %v3550_v26 = vadd.f32 %v2654_v28, %v2376_v63 }
 0x543   : > { %v1858_v0 = vpop.f32.mrf.mxu1 }
 0x544   : > { %1908 = vadd.xlane.f32.xlu0 %v3550_v26  ;;  %1902 = vadd.xlane.f32.xlu1 %v3548_v20  ;;  %v3554_v44 = vadd.f32 %v2376_v63, %v1858_v0 }
 0x546   : > { %v2657_v8 = vpop.f32.mrf.mxu1 }
 0x547   : > { %v3560_v35 = vadd.f32 %v2657_v8, %v2376_v63 }
 0x548   : > { %1904 = vadd.xlane.f32.xlu0 %v3554_v44  ;;  %v1871_v13 = vpop.f32.mrf.mxu1 }
 0x549   : > { %v3557_v9 = vadd.f32 %v2376_v63, %v1871_v13 }
 0x54a   : > { %v2658_v6 = vpop.f32.mrf.mxu1 }
 0x54b   : > { %1910 = vadd.xlane.f32.xlu1 %v3557_v9  ;;  %v3566_v32 = vadd.f32 %v2658_v6, %v2376_v63 }
 0x54c   : > { %v1874_v14 = vpop.f32.mrf.mxu1 }
 0x54d   : > { %v3562_v34 = vadd.f32 %v2376_v63, %v1874_v14 }
 0x54f   : > { %1912 = vadd.xlane.f32.xlu0 %v3562_v34  ;;  %1914 = vadd.xlane.f32.xlu1 %v3560_v35 }
 0x553   : > { %1916 = vadd.xlane.f32.xlu0 %v3566_v32 }
 0x5a9   : > { %v1891_v5 = vpop.xlane.xlu1 %1890 }
 0x5aa   : > { %v1920_v30 = vmul.f32 0.0078125, %v1891_v5 }
 0x5ac   : > { %v3569_v11 = vsub.f32 %v1832_v31, %v1920_v30 }
 0x5ad   : > { %v1887_v25 = vpop.xlane.xlu1 %1886  ;;  %v1893_v29 = vpop.xlane.xlu0 %1892 }
 0x5ae   : > { %v1918_v38 = vmul.f32 0.0078125, %v1887_v25  ;;  %v1921_v41 = vmul.f32 0.0078125, %v1893_v29  ;;  %v1952_v40 = vmul.f32 %v3569_v11, %v3569_v11 }
 0x5b0   : > { %v3573_v43 = vsub.f32 %v1824_v17, %v1918_v38  ;;  %v3575_v61 = vsub.f32 %v1835_v16, %v1921_v41  ;;  %1970 = vadd.xlane.f32.xlu1 %v1952_v40 }
 0x5b1   : > { %v1889_v42 = vpop.xlane.xlu0 %1888 }
 0x5b2   : > { %v1919_v53 = vmul.f32 0.0078125, %v1889_v42  ;;  %v1950_v54 = vmul.f32 %v3573_v43, %v3573_v43  ;;  %v1953_v7 = vmul.f32 %v3575_v61, %v3575_v61 }
 0x5b4   : > { %v3581_v47 = vsub.f32 %v1827_v57, %v1919_v53  ;;  %1966 = vadd.xlane.f32.xlu1 %v1950_v54  ;;  %1972 = vadd.xlane.f32.xlu0 %v1953_v7 }
 0x5b6   : > { %v1951_v46 = vmul.f32 %v3581_v47, %v3581_v47 }
 0x5b8   : > { %1968 = vadd.xlane.f32.xlu0 %v1951_v46 }
 0x5b9   : > { %v1899_v10 = vpop.xlane.xlu1 %1898 }
 0x5ba   : > { %v1924_v45 = vmul.f32 0.0078125, %v1899_v10 }
 0x5bc   : > { %v3585_v62 = vsub.f32 %v1848_v49, %v1924_v45 }
 0x5bd   : > { %v1895_v36 = vpop.xlane.xlu1 %1894  ;;  %v1901_v22 = vpop.xlane.xlu0 %1900 }
 0x5be   : > { %v1922_v55 = vmul.f32 0.0078125, %v1895_v36  ;;  %v1925_v23 = vmul.f32 0.0078125, %v1901_v22  ;;  %v1956_v24 = vmul.f32 %v3585_v62, %v3585_v62 }
 0x5c0   : > { %v3589_v33 = vsub.f32 %v1840_v27, %v1922_v55  ;;  %v3591_v52 = vsub.f32 %v1851_v3, %v1925_v23  ;;  %1978 = vadd.xlane.f32.xlu1 %v1956_v24 }
 0x5c1   : > { %v1897_v51 = vpop.xlane.xlu0 %1896 }
 0x5c2   : > { %v1923_v56 = vmul.f32 0.0078125, %v1897_v51  ;;  %v1954_v4 = vmul.f32 %v3589_v33, %v3589_v33  ;;  %v1957_v60 = vmul.f32 %v3591_v52, %v3591_v52 }
 0x5c4   : > { %v3597_v37 = vsub.f32 %v1843_v12, %v1923_v56  ;;  %1974 = vadd.xlane.f32.xlu1 %v1954_v4  ;;  %1980 = vadd.xlane.f32.xlu0 %v1957_v60 }
 0x5c6   : > { %v1955_v63 = vmul.f32 %v3597_v37, %v3597_v37 }
 0x5c8   : > { %1976 = vadd.xlane.f32.xlu0 %v1955_v63 }
 0x5c9   : > { %v1907_v18 = vpop.xlane.xlu1 %1906 }
 0x5ca   : > { %v1928_v31 = vmul.f32 0.0078125, %v1907_v18 }
 0x5cc   : > { %v3602_v39 = vsub.f32 %v3545_v19, %v1928_v31 }
 0x5cd   : > { %v1903_v1 = vpop.xlane.xlu1 %1902  ;;  %v1909_v17 = vpop.xlane.xlu0 %1908 }
 0x5ce   : > { %v1926_v16 = vmul.f32 0.0078125, %v1903_v1  ;;  %v1929_v58 = vmul.f32 0.0078125, %v1909_v17  ;;  %v1960_v57 = vmul.f32 %v3602_v39, %v3602_v39 }
 0x5d0   : > { %v3607_v2 = vsub.f32 %v3548_v20, %v1926_v16  ;;  %v3610_v49 = vsub.f32 %v3550_v26, %v1929_v58  ;;  %1986 = vadd.xlane.f32.xlu1 %v1960_v57 }
 0x5d1   : > { %v1905_v48 = vpop.xlane.xlu0 %1904 }
 0x5d2   : > { %v1927_v21 = vmul.f32 0.0078125, %v1905_v48  ;;  %v1958_v27 = vmul.f32 %v3607_v2, %v3607_v2  ;;  %v1961_v3 = vmul.f32 %v3610_v49, %v3610_v49 }
 0x5d4   : > { %v3617_v15 = vsub.f32 %v3554_v44, %v1927_v21  ;;  %1982 = vadd.xlane.f32.xlu1 %v1958_v27  ;;  %v1911_v12 = vpop.xlane.xlu1 %1910  ;;  %1988 = vadd.xlane.f32.xlu0 %v1961_v3 }
 0x5d5   : > { %v1930_v50 = vmul.f32 0.0078125, %v1911_v12 }
 0x5d6   : > { %v1959_v19 = vmul.f32 %v3617_v15, %v3617_v15 }
 0x5d7   : > { %v3622_v59 = vsub.f32 %v3557_v9, %v1930_v50 }
 0x5d8   : > { %v1915_v28 = vpop.xlane.xlu1 %1914  ;;  %1984 = vadd.xlane.f32.xlu0 %v1959_v19  ;;  %v1913_v20 = vpop.xlane.xlu0 %1912  ;;  %v3646_v19 = vld [vmem:[%s3751_s5 + $0x1] ss:$0 sm:$0xff] }
 0x5d9   : > { %v1932_v26 = vmul.f32 0.0078125, %v1915_v28  ;;  %v1931_v0 = vmul.f32 0.0078125, %v1913_v20  ;;  %v1962_v8 = vmul.f32 %v3622_v59, %v3622_v59 }
 0x5db   : > { %v3627_v44 = vsub.f32 %v3560_v35, %v1932_v26  ;;  %v3630_v13 = vsub.f32 %v3562_v34, %v1931_v0  ;;  %1990 = vadd.xlane.f32.xlu1 %v1962_v8 }
 0x5dc   : > { %v1917_v6 = vpop.xlane.xlu0 %1916 }
 0x5dd   : > { %v1933_v14 = vmul.f32 0.0078125, %v1917_v6  ;;  %v1964_v9 = vmul.f32 %v3627_v44, %v3627_v44  ;;  %v1963_v5 = vmul.f32 %v3630_v13, %v3630_v13 }
 0x5df   : > { %v3637_v30 = vsub.f32 %v3566_v32, %v1933_v14  ;;  %1994 = vadd.xlane.f32.xlu1 %v1964_v9  ;;  %1992 = vadd.xlane.f32.xlu0 %v1963_v5 }
 0x5e1   : > { %v1965_v35 = vmul.f32 %v3637_v30, %v3637_v30 }
 0x5e3   : > { %1996 = vadd.xlane.f32.xlu0 %v1965_v35 }
 0x639   : > { %v1971_v25 = vpop.xlane.xlu1 %1970 }
 0x63a   : > { %v2000_v42 = vmul.f32 0.0078125, %v1971_v25 }
 0x63c   : > { %v2016_v10 = vadd.f32 1e-05, %v2000_v42 }
 0x63d   : > { %v1973_v34 = vpop.xlane.xlu0 %1972  ;;  %v1967_v38 = vpop.xlane.xlu1 %1966 }
 0x63e   : > { %v2001_v41 = vmul.f32 0.0078125, %v1973_v34  ;;  %v1998_v53 = vmul.f32 0.0078125, %v1967_v38 }
 0x640   : > { %v2017_v54 = vadd.f32 1e-05, %v2001_v41  ;;  %v2014_v32 = vadd.f32 1e-05, %v1998_v53 }
 0x641   : > { %v1969_v29 = vpop.xlane.xlu0 %1968 }
 0x642   : > { %v1999_v40 = vmul.f32 0.0078125, %v1969_v29  ;;  %2772 = vrsqrt.f32 %v2017_v54 }
 0x644   : > { %v2015_v7 = vadd.f32 1e-05, %v1999_v40 }
 0x646   : > { %2774 = vrsqrt.f32 %v2015_v7 }
 0x647   : > { %2776 = vrsqrt.f32 %v2016_v10 }
 0x648   : > { %2778 = vrsqrt.f32 %v2014_v32 }
 0x649   : > { %v1979_v46 = vpop.xlane.xlu1 %1978 }
 0x64a   : > { %v2004_v45 = vmul.f32 0.0078125, %v1979_v46 }
 0x64c   : > { %v2020_v24 = vadd.f32 1e-05, %v2004_v45 }
 0x64d   : > { %v1975_v36 = vpop.xlane.xlu1 %1974  ;;  %v1981_v22 = vpop.xlane.xlu0 %1980 }
 0x64e   : > { %v2002_v55 = vmul.f32 0.0078125, %v1975_v36  ;;  %v2005_v23 = vmul.f32 0.0078125, %v1981_v22 }
 0x64f   : > { %v2773_v18 = vpop.eup %2772 }
 0x650   : > { %v2018_v51 = vadd.f32 1e-05, %v2002_v55  ;;  %v2021_v56 = vadd.f32 1e-05, %v2005_v23  ;;  %v2049_v57 = vmul.f32 %v2773_v18, %v3575_v61 }
 0x651   : > { %v1977_v4 = vpop.xlane.xlu0 %1976 }
 0x652   : > { %2780 = vrsqrt.f32 %v2018_v51  ;;  %v2003_v60 = vmul.f32 0.0078125, %v1977_v4  ;;  %v2073_v61 = vmul.f32 %v3646_v19, %v2049_v57 }
 0x653   : > { %2782 = vrsqrt.f32 %v2021_v56  ;;  %v2775_v1 = vpop.eup %2774 }
 0x654   : > { %2784 = vrsqrt.f32 %v2020_v24  ;;  %v2019_v63 = vadd.f32 1e-05, %v2003_v60  ;;  %v2777_v16 = vpop.eup %2776  ;;  %v2047_v21 = vmul.f32 %v2775_v1, %v3581_v47 }
 0x655   : > { %v2779_v58 = vpop.eup %2778  ;;  %v2048_v28 = vmul.f32 %v2777_v16, %v3569_v11  ;;  %v3657_v11 = vld [vmem:[%s3752_s6 + $0x1] ss:$0 sm:$0xff] }
 0x656   : > { %2786 = vrsqrt.f32 %v2019_v63  ;;  %v2046_v20 = vmul.f32 %v2779_v58, %v3573_v43  ;;  %v2071_v14 = vmul.f32 %v3646_v19, %v2047_v21  ;;  %v2097_v29 = vadd.f32 %v3657_v11, %v2073_v61 }
 0x657   : > { %v2072_v43 = vmul.f32 %v3646_v19, %v2048_v28 }
 0x658   : > { %v2070_v25 = vmul.f32 %v3646_v19, %v2046_v20  ;;  %v2095_v42 = vadd.f32 %v3657_v11, %v2071_v14 }
 0x659   : > { %v1987_v31 = vpop.xlane.xlu1 %1986  ;;  %v2096_v10 = vadd.f32 %v3657_v11, %v2072_v43 }
 0x65a   : > { %v2008_v17 = vmul.f32 0.0078125, %v1987_v31  ;;  %v2094_v32 = vadd.f32 %v3657_v11, %v2070_v25  ;;  %v2111_v24 = vmax.f32 %v2095_v42, 0.0 }
 0x65b   : > { %v2112_v18 = vmax.f32 %v2096_v10, 0.0 }
 0x65c   : > { %v2024_v48 = vadd.f32 1e-05, %v2008_v17  ;;  %v2110_v31 = vmax.f32 %v2094_v32, 0.0 }
 0x65d   : > { %v1983_v27 = vpop.xlane.xlu1 %1982  ;;  %v1989_v3 = vpop.xlane.xlu0 %1988 }
 0x65e   : > { %2788 = vrsqrt.f32 %v2024_v48  ;;  %v2006_v12 = vmul.f32 0.0078125, %v1983_v27  ;;  %v2009_v26 = vmul.f32 0.0078125, %v1989_v3  ;;  %v2126_v27 = vadd.f32 %v2111_v24, %v2110_v31 }
 0x65f   : > { %v2781_v50 = vpop.eup %2780 }
 0x660   : > { %v2783_v0 = vpop.eup %2782  ;;  %v2050_v47 = vmul.f32 %v2781_v50, %v3589_v33  ;;  %v2022_v8 = vadd.f32 1e-05, %v2006_v12  ;;  %v2025_v9 = vadd.f32 1e-05, %v2009_v26 }
 0x661   : > { %v2785_v6 = vpop.eup %2784  ;;  %v1985_v5 = vpop.xlane.xlu0 %1984  ;;  %v2053_v35 = vmul.f32 %v2783_v0, %v3591_v52 }
 0x662   : > { %2790 = vrsqrt.f32 %v2022_v8  ;;  %v2007_v33 = vmul.f32 0.0078125, %v1985_v5  ;;  %v2052_v38 = vmul.f32 %v2785_v6, %v3585_v62  ;;  %v2074_v41 = vmul.f32 %v3646_v19, %v2050_v47 }
 0x663   : > { %v2787_v34 = vpop.eup %2786  ;;  %2792 = vrsqrt.f32 %v2025_v9  ;;  %v2077_v7 = vmul.f32 %v3646_v19, %v2053_v35  ;;  %v2113_v62 = vmax.f32 %v2097_v29, 0.0  ;;  %v2127_v8 = vrot.slane %v2126_v27, 4 }
 0x664   : > { %v2051_v52 = vmul.f32 %v2787_v34, %v3597_v37  ;;  %v1991_v40 = vpop.xlane.xlu1 %1990  ;;  %v2023_v53 = vadd.f32 1e-05, %v2007_v33  ;;  %v2076_v36 = vmul.f32 %v3646_v19, %v2052_v38  ;;  %v2098_v37 = vadd.f32 %v3657_v11, %v2074_v41 }
 0x665   : > { %v2010_v54 = vmul.f32 0.0078125, %v1991_v40  ;;  %v2101_v4 = vadd.f32 %v3657_v11, %v2077_v7  ;;  %v2133_v21 = vadd.f32 %v2113_v62, %v2112_v18  ;;  %v2128_v25 = vadd.f32 %v2127_v8, %v2126_v27 }
 0x666   : > { %v2075_v46 = vmul.f32 %v3646_v19, %v2051_v52  ;;  %2794 = vrsqrt.f32 %v2023_v53  ;;  %v2100_v16 = vadd.f32 %v3657_v11, %v2076_v36  ;;  %v2114_v58 = vmax.f32 %v2098_v37, 0.0 }
 0x667   : > { %v2026_v45 = vadd.f32 1e-05, %v2010_v54  ;;  %v2117_v12 = vmax.f32 %v2101_v4, 0.0  ;;  %v2129_v7 = vrot.slane %v2128_v25, 2 }
 0x668   : > { %v2099_v22 = vadd.f32 %v3657_v11, %v2075_v46  ;;  %v1995_v55 = vpop.xlane.xlu1 %1994  ;;  %v1993_v23 = vpop.xlane.xlu0 %1992  ;;  %v2116_v61 = vmax.f32 %v2100_v16, 0.0 }
 0x669   : > { %2796 = vrsqrt.f32 %v2026_v45  ;;  %v2012_v51 = vmul.f32 0.0078125, %v1995_v55  ;;  %v2011_v56 = vmul.f32 0.0078125, %v1993_v23 }
 0x66a   : > { %v2115_v60 = vmax.f32 %v2099_v22, 0.0  ;;  %v2147_v14 = vadd.f32 %v2117_v12, %v2116_v61 }
 0x66b   : > { %v2789_v63 = vpop.eup %2788  ;;  %v2028_v1 = vadd.f32 1e-05, %v2012_v51  ;;  %v2027_v17 = vadd.f32 1e-05, %v2011_v56  ;;  %v2130_v56 = vadd.f32 %v2129_v7, %v2128_v25 }
 0x66c   : > { %v2056_v57 = vmul.f32 %v2789_v63, %v3602_v39  ;;  %v1997_v48 = vpop.xlane.xlu0 %1996  ;;  %v2140_v50 = vadd.f32 %v2115_v60, %v2114_v58  ;;  %v2134_v39 = vrot.slane %v2133_v21, 4  ;;  %v2148_v41 = vrot.slane %v2147_v14, 4 }
 0x66d   : > { %2798 = vrsqrt.f32 %v2028_v1  ;;  %v2013_v3 = vmul.f32 0.0078125, %v1997_v48  ;;  %v2131_v48 = vrot.slane %v2130_v56, 1 }
 0x66e   : > { %v2080_v28 = vmul.f32 %v3646_v19, %v2056_v57  ;;  %2800 = vrsqrt.f32 %v2027_v17  ;;  %v2141_v9 = vrot.slane %v2140_v50, 4  ;;  %v2135_v38 = vadd.f32 %v2134_v39, %v2133_v21 }
 0x66f   : > { %v2791_v20 = vpop.eup %2790  ;;  %v2029_v26 = vadd.f32 1e-05, %v2013_v3  ;;  %v2149_v62 = vadd.f32 %v2148_v41, %v2147_v14 }
 0x670   : > { %v2793_v0 = vpop.eup %2792  ;;  %v2054_v47 = vmul.f32 %v2791_v20, %v3607_v2  ;;  %v2104_v5 = vadd.f32 %v3657_v11, %v2080_v28  ;;  %v2136_v45 = vrot.slane %v2135_v38, 2 }
 0x671   : > { %v2057_v6 = vmul.f32 %v2793_v0, %v3610_v49  ;;  %2802 = vrsqrt.f32 %v2029_v26  ;;  %v2142_v49 = vadd.f32 %v2141_v9, %v2140_v50  ;;  %v2150_v58 = vrot.slane %v2149_v62, 2 }
 0x672   : > { %v2078_v35 = vmul.f32 %v3646_v19, %v2054_v47  ;;  %v2120_v52 = vmax.f32 %v2104_v5, 0.0  ;;  %v2137_v63 = vadd.f32 %v2136_v45, %v2135_v38 }
 0x673   : > { %v2081_v34 = vmul.f32 %v3646_v19, %v2057_v6  ;;  %v2795_v43 = vpop.eup %2794  ;;  %v2151_v26 = vadd.f32 %v2150_v58, %v2149_v62  ;;  %v2132_v6 = vadd.f32 %v2131_v48, %v2130_v56 }
 0x674   : > { %v2055_v29 = vmul.f32 %v2795_v43, %v3617_v15  ;;  %v2102_v40 = vadd.f32 %v3657_v11, %v2078_v35  ;;  %v2143_v15 = vrot.slane %v2142_v49, 2  ;;  %v2138_v3 = vrot.slane %v2137_v63, 1 }
 0x675   : > { %v2105_v33 = vadd.f32 %v3657_v11, %v2081_v34 }
 0x676   : > { %v2797_v2 = vpop.eup %2796  ;;  %v2079_v53 = vmul.f32 %v3646_v19, %v2055_v29  ;;  %v2118_v22 = vmax.f32 %v2102_v40, 0.0  ;;  %v2144_v18 = vadd.f32 %v2143_v15, %v2142_v49  ;;  %v2139_v14 = vadd.f32 %v2138_v3, %v2137_v63 }
 0x677   : > { %v2121_v42 = vmax.f32 %v2105_v33, 0.0  ;;  %v2058_v54 = vmul.f32 %v2797_v2, %v3622_v59 }
 0x678   : > { %v2103_v10 = vadd.f32 %v3657_v11, %v2079_v53  ;;  %v2145_v28 = vrot.slane %v2144_v18, 1  ;;  %v2184_v40 = vmul.f32 0.0625, %v2139_v14 }
 0x679   : > { %v2161_v46 = vadd.f32 %v2121_v42, %v2120_v52  ;;  %v2082_v36 = vmul.f32 %v3646_v19, %v2058_v54 }
 0x67a   : > { %v2799_v32 = vpop.eup %2798  ;;  %v2119_v55 = vmax.f32 %v2103_v10, 0.0  ;;  %v2146_v9 = vadd.f32 %v2145_v28, %v2144_v18 }
 0x67b   : > { %v2801_v37 = vpop.eup %2800  ;;  %v2060_v23 = vmul.f32 %v2799_v32, %v3627_v44  ;;  %v2162_v24 = vrot.slane %v2161_v46, 4  ;;  %v2106_v31 = vadd.f32 %v3657_v11, %v2082_v36 }
 0x67c   : > { %v2059_v51 = vmul.f32 %v2801_v37, %v3630_v13  ;;  %v2154_v59 = vadd.f32 %v2119_v55, %v2118_v22  ;;  %v2185_v38 = vmul.f32 0.0625, %v2146_v9 }
 0x67d   : > { %v2084_v4 = vmul.f32 %v3646_v19, %v2060_v23  ;;  %v2163_v57 = vadd.f32 %v2162_v24, %v2161_v46  ;;  %v2122_v12 = vmax.f32 %v2106_v31, 0.0 }
 0x67e   : > { %v2803_v60 = vpop.eup %2802  ;;  %v2083_v1 = vmul.f32 %v3646_v19, %v2059_v51  ;;  %v2155_v17 = vrot.slane %v2154_v59, 4 }
 0x67f   : > { %v2061_v16 = vmul.f32 %v2803_v60, %v3637_v30  ;;  %v2108_v13 = vadd.f32 %v3657_v11, %v2084_v4  ;;  %v2164_v61 = vrot.slane %v2163_v57, 2 }
 0x680   : > { %v2107_v44 = vadd.f32 %v3657_v11, %v2083_v1  ;;  %v2156_v27 = vadd.f32 %v2155_v17, %v2154_v59 }
 0x681   : > { %v2085_v21 = vmul.f32 %v3646_v19, %v2061_v16  ;;  %v2124_v47 = vmax.f32 %v2108_v13, 0.0  ;;  %v2152_v19 = vrot.slane %v2151_v26, 1  ;;  %v2165_v34 = vadd.f32 %v2164_v61, %v2163_v57 }
 0x682   : > { %v2123_v50 = vmax.f32 %v2107_v44, 0.0  ;;  %v2157_v0 = vrot.slane %v2156_v27, 2 }
 0x683   : > { %v2109_v20 = vadd.f32 %v3657_v11, %v2085_v21  ;;  %v2183_v11 = vmul.f32 0.0625, %v2132_v6  ;;  %v2153_v41 = vadd.f32 %v2152_v19, %v2151_v26  ;;  %v2166_v49 = vrot.slane %v2165_v34, 1 }
 0x684   : > { %v2168_v30 = vadd.f32 %v2123_v50, %v2122_v12  ;;  %v2158_v39 = vadd.f32 %v2157_v0, %v2156_v27 }
 0x685   : > { %v2125_v8 = vmax.f32 %v2109_v20, 0.0  ;;  %v2200_v54 = vsel %vm2199_vm2, %v2184_v40, %v2183_v11  ;;  %v2167_v32 = vadd.f32 %v2166_v49, %v2165_v34  ;;  %v2186_v62 = vmul.f32 0.0625, %v2153_v41 }
 0x686   : > { %v2169_v5 = vrot.slane %v2168_v30, 4  ;;  %v2159_v35 = vrot.slane %v2158_v39, 1  ;;  %v2202_v10 = vsel %vm2201_vm3, %v2185_v38, %v2200_v54 }
 0x687   : > { %v2175_v43 = vadd.f32 %v2125_v8, %v2124_v47  ;;  %v2204_v37 = vsel %vm2203_vm4, %v2186_v62, %v2202_v10  ;;  %v2188_v24 = vmul.f32 0.0625, %v2167_v32 }
 0x688   : > { %v2170_v25 = vadd.f32 %v2169_v5, %v2168_v30  ;;  %v2160_v29 = vadd.f32 %v2159_v35, %v2158_v39 }
 0x689   : > { %v2176_v33 = vrot.slane %v2175_v43, 4 }
 0x68a   : > { %v2171_v2 = vrot.slane %v2170_v25, 2  ;;  %v2187_v46 = vmul.f32 0.0625, %v2160_v29 }
 0x68b   : > { %v2177_v52 = vadd.f32 %v2176_v33, %v2175_v43 }
 0x68c   : > { %v2172_v42 = vadd.f32 %v2171_v2, %v2170_v25  ;;  %v2206_v55 = vsel %vm2205_vm5, %v2187_v46, %v2204_v37 }
 0x68d   : > { %v2178_v53 = vrot.slane %v2177_v52, 2  ;;  %v2208_v56 = vsel %vm2207_vm6, %v2188_v24, %v2206_v55 }
 0x68e   : > { %v2173_v7 = vrot.slane %v2172_v42, 1 }
 0x68f   : > { %v2179_v45 = vadd.f32 %v2178_v53, %v2177_v52 }
 0x690   : > { %v2174_v15 = vadd.f32 %v2173_v7, %v2172_v42 }
 0x691   : > { %v2180_v36 = vrot.slane %v2179_v45, 1 }
 0x692   : > { %v2189_v22 = vmul.f32 0.0625, %v2174_v15 }
 0x693   : > { %v2181_v23 = vadd.f32 %v2180_v36, %v2179_v45 }
 0x694   : > { %v2210_v59 = vsel %vm2209_vm7, %v2189_v22, %v2208_v56 }
 0x695   : > { %v2190_v51 = vmul.f32 0.0625, %v2181_v23 }
 0x697   : > { %v2212_v4 = vsel %vm2211_vm8, %v2190_v51, %v2210_v59 }
 0x698   : > { %2214 = vst [vmem:[%s325_s20] sm:$0xff] %v2212_v4 }
 0x699   : > { %2843 = shalt.err (!%p2840_p0)
}
 0x69a   : > { %s2844_s15 = scalar_lea.hbm %s3709_s29, 128  ;;  %s2848_s18 = scalar_lea.hbm %s3753_s7, 256 }
 0x69b   : > { %p2845_p1 = scmp.ne.s32.totalorder %s3709_s29, %s2844_s15  ;;  %p2849_p4 = scmp.lt.s32.totalorder %s3709_s29, %s3753_s7 }
 0x69c   : > { %p2850_p7 = scmp.lt.s32.totalorder %s2848_s18, %s2844_s15 }
 0x69d   : > { %p2846_p2 = pnand %p2845_p1, %p2981_p5 }
 0x69e   : > { %p2851_p6 = por %p2850_p7, %p2849_p4 }
 0x69f   : > { %p2847_p3 = pneg %p2846_p2 }
 0x6a1   : > { %p2852_p8 = pnand %p2851_p6, %p2847_p3 }
 0x6a3   : > { %2855 = shalt.err (!%p2852_p8)
}
 0x6a4   : > { %2663 = dma.vmem_to_hbm [thread:$0]  (%p2981_p5), %s2230_s21, 128, %s3709_s29, %s2216_s8  }
 0x6a5 PF: > { %p2675_p9 = scmp.ge.s32.totalorder %s2894_s27, 2  ;;  %s2241_s22 = sand.u32 1, %s2882_s24  }
 0x6a6   : > { %p3757_p10 = scmp.ne.s32.totalorder %s3755_s12, 0  ;;  %s2242_s23 = scalar_lea.sflag [#allocation4], %s2241_s22 }
 0x6a8   : > { %p2670_p11 = pnand %p2675_p9, %p3757_p10 }
 0x6aa   : > { %p2671_p12 = pneg %p2670_p11 }
 0x6ac   : > { %2877 = dma.done.wait (%p2671_p12), %s2242_s23, 128  }
 0x6ad   : > { %2879 = vsyncadd (%p2671_p12), %s2242_s23, 4294967168  ;;  %p18_p13 = scmp.ge.s32.totalorder %s2968_s30, 4   ;;  %s3758_s24 = smov %s2886_s25 }
 0x6ae   : > { %s3759_s25 = smov %s2890_s26  ;;  %s3760_s26 = smov %s2979_s10 }
 0x6af   : > { %s3761_s27 = smov %s2968_s30  ;;  %20 = sbr.rel (!%p18_p13) target bundleno = 4 (0x4), region = 98 }
 0x6b4   :  { %2247 = vsyncpa [#allocation3], 1 }
 0x6b5   :  { %2249 = vsyncpa [#allocation3 + $0x1], 1 }
 0x6b6   :  { %2250 = vsyncpa [#allocation4], 1 }
 0x6b7   :  { %2252 = vsyncpa [#allocation4 + $0x1], 1 }

</bundles_post_ra>
